<compile_context>
chip_gen: v7x
topology: tpu7x:2x2x1
jax: 0.10.0
libtpu: 0.0.40
codegen_flags: <defaults>
</compile_context>

<pallas_src>
import functools
import math

import jax
import jax.numpy as jnp
import numpy as np
from jax.experimental import pallas as pl
from jax.experimental.pallas import tpu as pltpu  # noqa: F401  (TPU backend)

# Problem sizes (small, consistent with the module).
B, S, D = 2, 8, 32
NUM_HEADS = 4
HEAD_DIM = D // NUM_HEADS
HIDDEN = 64
EPS = 1e-5
NEG = -1e9
PREC = jax.lax.Precision.HIGHEST  # exact f32 matmuls (matches f32 PyTorch within 1e-4)


# ----------------------------------------------------------------------------
# Pallas kernel: full encoder layer, single invocation, batch folded into rows
# ----------------------------------------------------------------------------
def encoder_layer_kernel(x_ref, bias_ref,
                         wqkv_ref, bqkv_ref, wo_ref, bo_ref,
                         g1_ref, be1_ref,
                         w1_ref, b1_ref, w2_ref, b2_ref,
                         g2_ref, be2_ref,
                         o_ref,
                         *, num_heads, head_dim, eps):
    xf = x_ref[...]                       # (B*S, D)
    bias = bias_ref[...]                  # (B*S, B*S) block-diag + key-padding bias

    # --- fused, scale-folded QKV projection ------------------------------
    qkv = jnp.dot(xf, wqkv_ref[...], precision=PREC,
                  preferred_element_type=jnp.float32) + bqkv_ref[...]   # (B*S, 3D)
    d = num_heads * head_dim
    q = qkv[:, :d]
    k = qkv[:, d:2 * d]
    v = qkv[:, 2 * d:]

    # --- multi-head attention (batch folded via block-diagonal mask) ------
    outs = []
    for h in range(num_heads):            # 4-way unrolled; each op spans all B*S rows
        lo = h * head_dim
        qh = q[:, lo:lo + head_dim]        # (B*S, hd)
        kh = k[:, lo:lo + head_dim]
        vh = v[:, lo:lo + head_dim]
        s = jax.lax.dot_general(qh, kh, (((1,), (1,)), ((), ())),
                                precision=PREC,
                                preferred_element_type=jnp.float32) + bias
        s = s - jnp.max(s, axis=-1, keepdims=True)
        p = jnp.exp(s)
        p = p * (1.0 / jnp.sum(p, axis=-1, keepdims=True))
        # TODO(synk): attention-weight dropout (p=0.2) is train-only; identity in eval.
        outs.append(jnp.dot(p, vh, precision=PREC,
                            preferred_element_type=jnp.float32))         # (B*S, hd)
    o_cat = jnp.concatenate(outs, axis=-1)                                # (B*S, D)
    attn = jnp.dot(o_cat, wo_ref[...], precision=PREC,
                   preferred_element_type=jnp.float32) + bo_ref[...]

    # --- residual + LayerNorm1 (dropout = identity in eval) ---------------
    y = xf + attn
    mu = jnp.mean(y, axis=-1, keepdims=True)
    var = jnp.mean((y - mu) ** 2, axis=-1, keepdims=True)
    y = (y - mu) * jax.lax.rsqrt(var + eps) * g1_ref[...] + be1_ref[...]

    # --- position-wise FFN -------------------------------------------------
    h1 = jnp.dot(y, w1_ref[...], precision=PREC,
                 preferred_element_type=jnp.float32) + b1_ref[...]
    h1 = jnp.maximum(h1, 0.0)
    f = jnp.dot(h1, w2_ref[...], precision=PREC,
                preferred_element_type=jnp.float32) + b2_ref[...]

    # --- residual + LayerNorm2 ---------------------------------------------
    z = y + f
    mu2 = jnp.mean(z, axis=-1, keepdims=True)
    var2 = jnp.mean((z - mu2) ** 2, axis=-1, keepdims=True)
    z = (z - mu2) * jax.lax.rsqrt(var2 + eps) * g2_ref[...] + be2_ref[...]

    o_ref[...] = z                         # one wide (B*S, D) store


# ----------------------------------------------------------------------------
# Wrapper: parameter prep (fusion / transposition / scale folding) + pallas_call
# ----------------------------------------------------------------------------
def encoder_layer(x, key_padding_mask, raw_params):
    (wq, bq, wk, bk, wv, bv, wo, bo,
     g1, be1, w1, b1, w2, b2, g2, be2) = raw_params

    scale = 1.0 / math.sqrt(HEAD_DIM)
    # fused QKV, scale folded into the Q rows; transposed so kernel does x @ W
    wqkv_t = jnp.concatenate([wq * scale, wk, wv], axis=0).T      # (D, 3D)
    bqkv = jnp.concatenate([bq * scale, bk, bv]).reshape(1, 3 * D)
    wo_t = wo.T                                                   # (D, D)
    bo2 = bo.reshape(1, D)
    g1r, be1r = g1.reshape(1, D), be1.reshape(1, D)
    g2r, be2r = g2.reshape(1, D), be2.reshape(1, D)
    w1_t, b1r = w1.T, b1.reshape(1, HIDDEN)                       # (D, HIDDEN)
    w2_t, b2r = w2.T, b2.reshape(1, D)                            # (HIDDEN, D)

    # Combined additive attention bias over the folded (B*S) key axis:
    # 0 where the key is in the same batch element AND not padded, else -1e9.
    n = B * S
    batch_of = jnp.arange(n, dtype=jnp.int32) // S
    same_batch = batch_of[:, None] == batch_of[None, :]
    keep = same_batch & (~key_padding_mask.reshape(n))[None, :]
    bias = jnp.where(keep, 0.0, NEG).astype(jnp.float32)          # (B*S, B*S)

    xf = x.reshape(B * S, D)

    kernel = functools.partial(encoder_layer_kernel,
                               num_heads=NUM_HEADS, head_dim=HEAD_DIM, eps=EPS)

    out = pl.pallas_call(
        kernel,
        out_shape=jax.ShapeDtypeStruct((B * S, D), jnp.float32),
    )(xf, bias, wqkv_t, bqkv, wo_t, bo2, g1r, be1r,
      w1_t, b1r, w2_t, b2r, g2r, be2r)
    return out.reshape(B, S, D)


# ----------------------------------------------------------------------------
# Pure-JAX reference (mirrors PyTorch eval-mode forward) for validation
# ----------------------------------------------------------------------------
def _layernorm(x, g, b):
    mu = jnp.mean(x, axis=-1, keepdims=True)
    var = jnp.mean((x - mu) ** 2, axis=-1, keepdims=True)
    return (x - mu) * jax.lax.rsqrt(var + EPS) * g + b


def reference(x, mask, raw_params):
    (wq, bq, wk, bk, wv, bv, wo, bo,
     g1, be1, w1, b1, w2, b2, g2, be2) = raw_params
    mb = jnp.where(mask, NEG, 0.0)[:, None, None, :]          # (B,1,1,S)
    q = jnp.einsum('bsd,ed->bse', x, wq, precision=PREC) + bq
    k = jnp.einsum('bsd,ed->bse', x, wk, precision=PREC) + bk
    v = jnp.einsum('bsd,ed->bse', x, wv, precision=PREC) + bv
    split = lambda t: t.reshape(B, S, NUM_HEADS, HEAD_DIM).transpose(0, 2, 1, 3)
    qh, kh, vh = split(q), split(k), split(v)
    s = jnp.einsum('bhqe,bhke->bhqk', qh, kh, precision=PREC) / math.sqrt(HEAD_DIM) + mb
    p = jax.nn.softmax(s, axis=-1)
    oh = jnp.einsum('bhqk,bhke->bhqe', p, vh, precision=PREC)
    o = oh.transpose(0, 2, 1, 3).reshape(B, S, D)
    o = jnp.einsum('bsd,ed->bse', o, wo, precision=PREC) + bo
    y = _layernorm(x + o, g1, be1)
    f = jnp.maximum(jnp.einsum('bsd,hd->bsh', y, w1, precision=PREC) + b1, 0.0)
    f = jnp.einsum('bsh,dh->bsd', f, w2, precision=PREC) + b2
    return _layernorm(y + f, g2, be2)


# ----------------------------------------------------------------------------
def init_params(key):
    ks = jax.random.split(key, 16)

    def lin_w(k, out_d, in_d):
        return (jax.random.normal(k, (out_d, in_d), jnp.float32)
                / math.sqrt(in_d)).astype(jnp.float32)

    def lin_b(k, out_d):
        return (jax.random.normal(k, (out_d,), jnp.float32) * 0.02).astype(jnp.float32)

    wq, wk, wv = lin_w(ks[0], D, D), lin_w(ks[1], D, D), lin_w(ks[2], D, D)
    bq, bk, bv = lin_b(ks[3], D), lin_b(ks[4], D), lin_b(ks[5], D)
    wo, bo = lin_w(ks[6], D, D), lin_b(ks[7], D)
    g1, be1 = jnp.ones((D,), jnp.float32), jnp.zeros((D,), jnp.float32)
    w1, b1 = lin_w(ks[8], HIDDEN, D), lin_b(ks[9], HIDDEN)
    w2, b2 = lin_w(ks[10], D, HIDDEN), lin_b(ks[11], D)
    g2, be2 = jnp.ones((D,), jnp.float32), jnp.zeros((D,), jnp.float32)
    return (wq, bq, wk, bk, wv, bv, wo, bo,
            g1, be1, w1, b1, w2, b2, g2, be2)


if __name__ == "__main__":
    key = jax.random.PRNGKey(0)
    kx, kp = jax.random.split(key)
    x = jax.random.normal(kx, (B, S, D), jnp.float32)
    # key_padding_mask: True = ignore that key position (last 2 keys of batch 1)
    mask = jnp.zeros((B, S), dtype=bool).at[1, -2:].set(True)
    params = init_params(kp)

    out = encoder_layer(x, mask, params)
    out = jax.block_until_ready(out)

    ref = jax.block_until_ready(reference(x, mask, params))
    np.testing.assert_allclose(np.asarray(out), np.asarray(ref),
                               rtol=1e-4, atol=1e-4)
    assert out.shape == (B, S, D) and out.dtype == jnp.float32
    print("KERNEL_OK")
</pallas_src>

<mosaic_0001>
module attributes {stable_mosaic.version = 11 : i64} {
  func.func @encoder_layer_kernel(%arg0: memref<16x32xf32, #tpu.memory_space<vmem>>, %arg1: memref<16x16xf32, #tpu.memory_space<vmem>>, %arg2: memref<32x96xf32, #tpu.memory_space<vmem>>, %arg3: memref<1x96xf32, #tpu.memory_space<vmem>>, %arg4: memref<32x32xf32, #tpu.memory_space<vmem>>, %arg5: memref<1x32xf32, #tpu.memory_space<vmem>>, %arg6: memref<1x32xf32, #tpu.memory_space<vmem>>, %arg7: memref<1x32xf32, #tpu.memory_space<vmem>>, %arg8: memref<32x64xf32, #tpu.memory_space<vmem>>, %arg9: memref<1x64xf32, #tpu.memory_space<vmem>>, %arg10: memref<64x32xf32, #tpu.memory_space<vmem>>, %arg11: memref<1x32xf32, #tpu.memory_space<vmem>>, %arg12: memref<1x32xf32, #tpu.memory_space<vmem>>, %arg13: memref<1x32xf32, #tpu.memory_space<vmem>>, %arg14: memref<16x32xf32, #tpu.memory_space<vmem>>) attributes {dimension_semantics = [], scalar_prefetch = 0 : i64, scratch_operands = 0 : i64, tpu.core_type = #tpu.core_type<tc>} {
    %c0 = arith.constant 0 : index
    %c0_0 = arith.constant 0 : index
    %0 = vector.load %arg0[%c0, %c0_0] : memref<16x32xf32, #tpu.memory_space<vmem>>, vector<16x32xf32>
    %c0_1 = arith.constant 0 : index
    %c0_2 = arith.constant 0 : index
    %1 = vector.load %arg1[%c0_1, %c0_2] : memref<16x16xf32, #tpu.memory_space<vmem>>, vector<16x16xf32>
    %c0_3 = arith.constant 0 : index
    %c0_4 = arith.constant 0 : index
    %2 = vector.load %arg2[%c0_3, %c0_4] : memref<32x96xf32, #tpu.memory_space<vmem>>, vector<32x96xf32>
    %cst = arith.constant dense<0.000000e+00> : vector<16x96xf32>
    %3 = tpu.matmul %0, %2, %cst {dimension_numbers = #tpu.dot_dimension_numbers<[1], [0], [0], [1], [0, 0, 1, 1], [], []>, precision = #tpu.contract_precision<fp32>} : vector<16x32xf32>, vector<32x96xf32>, vector<16x96xf32> -> vector<16x96xf32>
    %c0_5 = arith.constant 0 : index
    %c0_6 = arith.constant 0 : index
    %4 = vector.load %arg3[%c0_5, %c0_6] : memref<1x96xf32, #tpu.memory_space<vmem>>, vector<1x96xf32>
    %5 = vector.broadcast %4 : vector<1x96xf32> to vector<16x96xf32>
    %6 = arith.addf %3, %5 : vector<16x96xf32>
    %7 = vector.extract_strided_slice %6 {offsets = [0, 0], sizes = [16, 32], strides = [1, 1]} : vector<16x96xf32> to vector<16x32xf32>
    %8 = vector.extract_strided_slice %6 {offsets = [0, 32], sizes = [16, 32], strides = [1, 1]} : vector<16x96xf32> to vector<16x32xf32>
    %9 = vector.extract_strided_slice %6 {offsets = [0, 64], sizes = [16, 32], strides = [1, 1]} : vector<16x96xf32> to vector<16x32xf32>
    %10 = vector.extract_strided_slice %7 {offsets = [0, 0], sizes = [16, 8], strides = [1, 1]} : vector<16x32xf32> to vector<16x8xf32>
    %11 = vector.extract_strided_slice %8 {offsets = [0, 0], sizes = [16, 8], strides = [1, 1]} : vector<16x32xf32> to vector<16x8xf32>
    %12 = vector.extract_strided_slice %9 {offsets = [0, 0], sizes = [16, 8], strides = [1, 1]} : vector<16x32xf32> to vector<16x8xf32>
    %cst_7 = arith.constant dense<0.000000e+00> : vector<16x16xf32>
    %13 = tpu.matmul %10, %11, %cst_7 {dimension_numbers = #tpu.dot_dimension_numbers<[1], [1], [0], [0], [0, 0, 1, 0], [], []>, precision = #tpu.contract_precision<fp32>} : vector<16x8xf32>, vector<16x8xf32>, vector<16x16xf32> -> vector<16x16xf32>
    %14 = arith.addf %13, %1 : vector<16x16xf32>
    %cst_8 = arith.constant dense<0xFF800000> : vector<16xf32>
    %15 = vector.multi_reduction <maximumf>, %14, %cst_8 [1] : vector<16x16xf32> to vector<16xf32>
    %16 = vector.shape_cast %15 : vector<16xf32> to vector<16x1xf32>
    %17 = vector.broadcast %16 : vector<16x1xf32> to vector<16x16xf32>
    %18 = arith.subf %14, %17 : vector<16x16xf32>
    %19 = math.exp %18 : vector<16x16xf32>
    %cst_9 = arith.constant dense<0.000000e+00> : vector<16xf32>
    %20 = vector.multi_reduction <add>, %19, %cst_9 [1] : vector<16x16xf32> to vector<16xf32>
    %21 = vector.shape_cast %20 : vector<16xf32> to vector<16x1xf32>
    %cst_10 = arith.constant 1.000000e+00 : f32
    %22 = vector.broadcast %cst_10 : f32 to vector<16x1xf32>
    %23 = arith.divf %22, %21 : vector<16x1xf32>
    %24 = vector.broadcast %23 : vector<16x1xf32> to vector<16x16xf32>
    %25 = arith.mulf %19, %24 : vector<16x16xf32>
    %cst_11 = arith.constant dense<0.000000e+00> : vector<16x8xf32>
    %26 = tpu.matmul %25, %12, %cst_11 {dimension_numbers = #tpu.dot_dimension_numbers<[1], [0], [0], [1], [0, 0, 1, 1], [], []>, precision = #tpu.contract_precision<fp32>} : vector<16x16xf32>, vector<16x8xf32>, vector<16x8xf32> -> vector<16x8xf32>
    %27 = vector.extract_strided_slice %7 {offsets = [0, 8], sizes = [16, 8], strides = [1, 1]} : vector<16x32xf32> to vector<16x8xf32>
    %28 = vector.extract_strided_slice %8 {offsets = [0, 8], sizes = [16, 8], strides = [1, 1]} : vector<16x32xf32> to vector<16x8xf32>
    %29 = vector.extract_strided_slice %9 {offsets = [0, 8], sizes = [16, 8], strides = [1, 1]} : vector<16x32xf32> to vector<16x8xf32>
    %cst_12 = arith.constant dense<0.000000e+00> : vector<16x16xf32>
    %30 = tpu.matmul %27, %28, %cst_12 {dimension_numbers = #tpu.dot_dimension_numbers<[1], [1], [0], [0], [0, 0, 1, 0], [], []>, precision = #tpu.contract_precision<fp32>} : vector<16x8xf32>, vector<16x8xf32>, vector<16x16xf32> -> vector<16x16xf32>
    %31 = arith.addf %30, %1 : vector<16x16xf32>
    %cst_13 = arith.constant dense<0xFF800000> : vector<16xf32>
    %32 = vector.multi_reduction <maximumf>, %31, %cst_13 [1] : vector<16x16xf32> to vector<16xf32>
    %33 = vector.shape_cast %32 : vector<16xf32> to vector<16x1xf32>
    %34 = vector.broadcast %33 : vector<16x1xf32> to vector<16x16xf32>
    %35 = arith.subf %31, %34 : vector<16x16xf32>
    %36 = math.exp %35 : vector<16x16xf32>
    %cst_14 = arith.constant dense<0.000000e+00> : vector<16xf32>
    %37 = vector.multi_reduction <add>, %36, %cst_14 [1] : vector<16x16xf32> to vector<16xf32>
    %38 = vector.shape_cast %37 : vector<16xf32> to vector<16x1xf32>
    %cst_15 = arith.constant 1.000000e+00 : f32
    %39 = vector.broadcast %cst_15 : f32 to vector<16x1xf32>
    %40 = arith.divf %39, %38 : vector<16x1xf32>
    %41 = vector.broadcast %40 : vector<16x1xf32> to vector<16x16xf32>
    %42 = arith.mulf %36, %41 : vector<16x16xf32>
    %cst_16 = arith.constant dense<0.000000e+00> : vector<16x8xf32>
    %43 = tpu.matmul %42, %29, %cst_16 {dimension_numbers = #tpu.dot_dimension_numbers<[1], [0], [0], [1], [0, 0, 1, 1], [], []>, precision = #tpu.contract_precision<fp32>} : vector<16x16xf32>, vector<16x8xf32>, vector<16x8xf32> -> vector<16x8xf32>
    %44 = vector.extract_strided_slice %7 {offsets = [0, 16], sizes = [16, 8], strides = [1, 1]} : vector<16x32xf32> to vector<16x8xf32>
    %45 = vector.extract_strided_slice %8 {offsets = [0, 16], sizes = [16, 8], strides = [1, 1]} : vector<16x32xf32> to vector<16x8xf32>
    %46 = vector.extract_strided_slice %9 {offsets = [0, 16], sizes = [16, 8], strides = [1, 1]} : vector<16x32xf32> to vector<16x8xf32>
    %cst_17 = arith.constant dense<0.000000e+00> : vector<16x16xf32>
    %47 = tpu.matmul %44, %45, %cst_17 {dimension_numbers = #tpu.dot_dimension_numbers<[1], [1], [0], [0], [0, 0, 1, 0], [], []>, precision = #tpu.contract_precision<fp32>} : vector<16x8xf32>, vector<16x8xf32>, vector<16x16xf32> -> vector<16x16xf32>
    %48 = arith.addf %47, %1 : vector<16x16xf32>
    %cst_18 = arith.constant dense<0xFF800000> : vector<16xf32>
    %49 = vector.multi_reduction <maximumf>, %48, %cst_18 [1] : vector<16x16xf32> to vector<16xf32>
    %50 = vector.shape_cast %49 : vector<16xf32> to vector<16x1xf32>
    %51 = vector.broadcast %50 : vector<16x1xf32> to vector<16x16xf32>
    %52 = arith.subf %48, %51 : vector<16x16xf32>
    %53 = math.exp %52 : vector<16x16xf32>
    %cst_19 = arith.constant dense<0.000000e+00> : vector<16xf32>
    %54 = vector.multi_reduction <add>, %53, %cst_19 [1] : vector<16x16xf32> to vector<16xf32>
    %55 = vector.shape_cast %54 : vector<16xf32> to vector<16x1xf32>
    %cst_20 = arith.constant 1.000000e+00 : f32
    %56 = vector.broadcast %cst_20 : f32 to vector<16x1xf32>
    %57 = arith.divf %56, %55 : vector<16x1xf32>
    %58 = vector.broadcast %57 : vector<16x1xf32> to vector<16x16xf32>
    %59 = arith.mulf %53, %58 : vector<16x16xf32>
    %cst_21 = arith.constant dense<0.000000e+00> : vector<16x8xf32>
    %60 = tpu.matmul %59, %46, %cst_21 {dimension_numbers = #tpu.dot_dimension_numbers<[1], [0], [0], [1], [0, 0, 1, 1], [], []>, precision = #tpu.contract_precision<fp32>} : vector<16x16xf32>, vector<16x8xf32>, vector<16x8xf32> -> vector<16x8xf32>
    %61 = vector.extract_strided_slice %7 {offsets = [0, 24], sizes = [16, 8], strides = [1, 1]} : vector<16x32xf32> to vector<16x8xf32>
    %62 = vector.extract_strided_slice %8 {offsets = [0, 24], sizes = [16, 8], strides = [1, 1]} : vector<16x32xf32> to vector<16x8xf32>
    %63 = vector.extract_strided_slice %9 {offsets = [0, 24], sizes = [16, 8], strides = [1, 1]} : vector<16x32xf32> to vector<16x8xf32>
    %cst_22 = arith.constant dense<0.000000e+00> : vector<16x16xf32>
    %64 = tpu.matmul %61, %62, %cst_22 {dimension_numbers = #tpu.dot_dimension_numbers<[1], [1], [0], [0], [0, 0, 1, 0], [], []>, precision = #tpu.contract_precision<fp32>} : vector<16x8xf32>, vector<16x8xf32>, vector<16x16xf32> -> vector<16x16xf32>
    %65 = arith.addf %64, %1 : vector<16x16xf32>
    %cst_23 = arith.constant dense<0xFF800000> : vector<16xf32>
    %66 = vector.multi_reduction <maximumf>, %65, %cst_23 [1] : vector<16x16xf32> to vector<16xf32>
    %67 = vector.shape_cast %66 : vector<16xf32> to vector<16x1xf32>
    %68 = vector.broadcast %67 : vector<16x1xf32> to vector<16x16xf32>
    %69 = arith.subf %65, %68 : vector<16x16xf32>
    %70 = math.exp %69 : vector<16x16xf32>
    %cst_24 = arith.constant dense<0.000000e+00> : vector<16xf32>
    %71 = vector.multi_reduction <add>, %70, %cst_24 [1] : vector<16x16xf32> to vector<16xf32>
    %72 = vector.shape_cast %71 : vector<16xf32> to vector<16x1xf32>
    %cst_25 = arith.constant 1.000000e+00 : f32
    %73 = vector.broadcast %cst_25 : f32 to vector<16x1xf32>
    %74 = arith.divf %73, %72 : vector<16x1xf32>
    %75 = vector.broadcast %74 : vector<16x1xf32> to vector<16x16xf32>
    %76 = arith.mulf %70, %75 : vector<16x16xf32>
    %cst_26 = arith.constant dense<0.000000e+00> : vector<16x8xf32>
    %77 = tpu.matmul %76, %63, %cst_26 {dimension_numbers = #tpu.dot_dimension_numbers<[1], [0], [0], [1], [0, 0, 1, 1], [], []>, precision = #tpu.contract_precision<fp32>} : vector<16x16xf32>, vector<16x8xf32>, vector<16x8xf32> -> vector<16x8xf32>
    %78 = tpu.concatenate %26, %43, %60, %77 in 1 : vector<16x8xf32>, vector<16x8xf32>, vector<16x8xf32>, vector<16x8xf32> -> vector<16x32xf32>
    %c0_27 = arith.constant 0 : index
    %c0_28 = arith.constant 0 : index
    %79 = vector.load %arg4[%c0_27, %c0_28] : memref<32x32xf32, #tpu.memory_space<vmem>>, vector<32x32xf32>
    %cst_29 = arith.constant dense<0.000000e+00> : vector<16x32xf32>
    %80 = tpu.matmul %78, %79, %cst_29 {dimension_numbers = #tpu.dot_dimension_numbers<[1], [0], [0], [1], [0, 0, 1, 1], [], []>, precision = #tpu.contract_precision<fp32>} : vector<16x32xf32>, vector<32x32xf32>, vector<16x32xf32> -> vector<16x32xf32>
    %c0_30 = arith.constant 0 : index
    %c0_31 = arith.constant 0 : index
    %81 = vector.load %arg5[%c0_30, %c0_31] : memref<1x32xf32, #tpu.memory_space<vmem>>, vector<1x32xf32>
    %82 = vector.broadcast %81 : vector<1x32xf32> to vector<16x32xf32>
    %83 = arith.addf %80, %82 : vector<16x32xf32>
    %84 = arith.addf %0, %83 : vector<16x32xf32>
    %cst_32 = arith.constant dense<0.000000e+00> : vector<16xf32>
    %85 = vector.multi_reduction <add>, %84, %cst_32 [1] : vector<16x32xf32> to vector<16xf32>
    %86 = vector.shape_cast %85 : vector<16xf32> to vector<16x1xf32>
    %cst_33 = arith.constant 3.200000e+01 : f32
    %87 = vector.broadcast %cst_33 : f32 to vector<16x1xf32>
    %88 = arith.divf %86, %87 : vector<16x1xf32>
    %89 = vector.broadcast %88 : vector<16x1xf32> to vector<16x32xf32>
    %90 = arith.subf %84, %89 : vector<16x32xf32>
    %91 = arith.mulf %90, %90 : vector<16x32xf32>
    %cst_34 = arith.constant dense<0.000000e+00> : vector<16xf32>
    %92 = vector.multi_reduction <add>, %91, %cst_34 [1] : vector<16x32xf32> to vector<16xf32>
    %93 = vector.shape_cast %92 : vector<16xf32> to vector<16x1xf32>
    %cst_35 = arith.constant 3.200000e+01 : f32
    %94 = vector.broadcast %cst_35 : f32 to vector<16x1xf32>
    %95 = arith.divf %93, %94 : vector<16x1xf32>
    %96 = vector.broadcast %88 : vector<16x1xf32> to vector<16x32xf32>
    %97 = arith.subf %84, %96 : vector<16x32xf32>
    %cst_36 = arith.constant 9.99999974E-6 : f32
    %98 = vector.broadcast %cst_36 : f32 to vector<16x1xf32>
    %99 = arith.addf %95, %98 : vector<16x1xf32>
    %100 = math.rsqrt %99 : vector<16x1xf32>
    %101 = vector.broadcast %100 : vector<16x1xf32> to vector<16x32xf32>
    %102 = arith.mulf %97, %101 : vector<16x32xf32>
    %c0_37 = arith.constant 0 : index
    %c0_38 = arith.constant 0 : index
    %103 = vector.load %arg6[%c0_37, %c0_38] : memref<1x32xf32, #tpu.memory_space<vmem>>, vector<1x32xf32>
    %104 = vector.broadcast %103 : vector<1x32xf32> to vector<16x32xf32>
    %105 = arith.mulf %102, %104 : vector<16x32xf32>
    %c0_39 = arith.constant 0 : index
    %c0_40 = arith.constant 0 : index
    %106 = vector.load %arg7[%c0_39, %c0_40] : memref<1x32xf32, #tpu.memory_space<vmem>>, vector<1x32xf32>
    %107 = vector.broadcast %106 : vector<1x32xf32> to vector<16x32xf32>
    %108 = arith.addf %105, %107 : vector<16x32xf32>
    %c0_41 = arith.constant 0 : index
    %c0_42 = arith.constant 0 : index
    %109 = vector.load %arg8[%c0_41, %c0_42] : memref<32x64xf32, #tpu.memory_space<vmem>>, vector<32x64xf32>
    %cst_43 = arith.constant dense<0.000000e+00> : vector<16x64xf32>
    %110 = tpu.matmul %108, %109, %cst_43 {dimension_numbers = #tpu.dot_dimension_numbers<[1], [0], [0], [1], [0, 0, 1, 1], [], []>, precision = #tpu.contract_precision<fp32>} : vector<16x32xf32>, vector<32x64xf32>, vector<16x64xf32> -> vector<16x64xf32>
    %c0_44 = arith.constant 0 : index
    %c0_45 = arith.constant 0 : index
    %111 = vector.load %arg9[%c0_44, %c0_45] : memref<1x64xf32, #tpu.memory_space<vmem>>, vector<1x64xf32>
    %112 = vector.broadcast %111 : vector<1x64xf32> to vector<16x64xf32>
    %113 = arith.addf %110, %112 : vector<16x64xf32>
    %cst_46 = arith.constant 0.000000e+00 : f32
    %114 = vector.broadcast %cst_46 : f32 to vector<16x64xf32>
    %115 = arith.maximumf %113, %114 : vector<16x64xf32>
    %c0_47 = arith.constant 0 : index
    %c0_48 = arith.constant 0 : index
    %116 = vector.load %arg10[%c0_47, %c0_48] : memref<64x32xf32, #tpu.memory_space<vmem>>, vector<64x32xf32>
    %cst_49 = arith.constant dense<0.000000e+00> : vector<16x32xf32>
    %117 = tpu.matmul %115, %116, %cst_49 {dimension_numbers = #tpu.dot_dimension_numbers<[1], [0], [0], [1], [0, 0, 1, 1], [], []>, precision = #tpu.contract_precision<fp32>} : vector<16x64xf32>, vector<64x32xf32>, vector<16x32xf32> -> vector<16x32xf32>
    %c0_50 = arith.constant 0 : index
    %c0_51 = arith.constant 0 : index
    %118 = vector.load %arg11[%c0_50, %c0_51] : memref<1x32xf32, #tpu.memory_space<vmem>>, vector<1x32xf32>
    %119 = vector.broadcast %118 : vector<1x32xf32> to vector<16x32xf32>
    %120 = arith.addf %117, %119 : vector<16x32xf32>
    %121 = arith.addf %108, %120 : vector<16x32xf32>
    %cst_52 = arith.constant dense<0.000000e+00> : vector<16xf32>
    %122 = vector.multi_reduction <add>, %121, %cst_52 [1] : vector<16x32xf32> to vector<16xf32>
    %123 = vector.shape_cast %122 : vector<16xf32> to vector<16x1xf32>
    %cst_53 = arith.constant 3.200000e+01 : f32
    %124 = vector.broadcast %cst_53 : f32 to vector<16x1xf32>
    %125 = arith.divf %123, %124 : vector<16x1xf32>
    %126 = vector.broadcast %125 : vector<16x1xf32> to vector<16x32xf32>
    %127 = arith.subf %121, %126 : vector<16x32xf32>
    %128 = arith.mulf %127, %127 : vector<16x32xf32>
    %cst_54 = arith.constant dense<0.000000e+00> : vector<16xf32>
    %129 = vector.multi_reduction <add>, %128, %cst_54 [1] : vector<16x32xf32> to vector<16xf32>
    %130 = vector.shape_cast %129 : vector<16xf32> to vector<16x1xf32>
    %cst_55 = arith.constant 3.200000e+01 : f32
    %131 = vector.broadcast %cst_55 : f32 to vector<16x1xf32>
    %132 = arith.divf %130, %131 : vector<16x1xf32>
    %133 = vector.broadcast %125 : vector<16x1xf32> to vector<16x32xf32>
    %134 = arith.subf %121, %133 : vector<16x32xf32>
    %cst_56 = arith.constant 9.99999974E-6 : f32
    %135 = vector.broadcast %cst_56 : f32 to vector<16x1xf32>
    %136 = arith.addf %132, %135 : vector<16x1xf32>
    %137 = math.rsqrt %136 : vector<16x1xf32>
    %138 = vector.broadcast %137 : vector<16x1xf32> to vector<16x32xf32>
    %139 = arith.mulf %134, %138 : vector<16x32xf32>
    %c0_57 = arith.constant 0 : index
    %c0_58 = arith.constant 0 : index
    %140 = vector.load %arg12[%c0_57, %c0_58] : memref<1x32xf32, #tpu.memory_space<vmem>>, vector<1x32xf32>
    %141 = vector.broadcast %140 : vector<1x32xf32> to vector<16x32xf32>
    %142 = arith.mulf %139, %141 : vector<16x32xf32>
    %c0_59 = arith.constant 0 : index
    %c0_60 = arith.constant 0 : index
    %143 = vector.load %arg13[%c0_59, %c0_60] : memref<1x32xf32, #tpu.memory_space<vmem>>, vector<1x32xf32>
    %144 = vector.broadcast %143 : vector<1x32xf32> to vector<16x32xf32>
    %145 = arith.addf %142, %144 : vector<16x32xf32>
    %c0_61 = arith.constant 0 : index
    %c0_62 = arith.constant 0 : index
    %146 = vector.load %arg14[%c0_61, %c0_62] : memref<16x32xf32, #tpu.memory_space<vmem>>, vector<16x32xf32>
    tpu.vector_store %arg14[%c0_61, %c0_62], %145 {strides = array<i32>} : memref<16x32xf32, #tpu.memory_space<vmem>>, vector<16x32xf32>,
    return
  }
}

</mosaic_0001>

<bundles_post_ra>
// kernel: tpu_custom_call.1
= control target key start
LH: loop header
LB: loop body
LE: loop exit
PB: predicated region body
PF: predicated region fallthrough
CT: control target
= control target key end

     0   :  { %19 = vsyncpa [#allocation3], 0  ;;  %s8903_s0 = inlined_call_operand.hbm [shape: f32[16,32], index: 0, kind: input, shape index: {}]   ;;  %s8904_s1 = inlined_call_operand.hbm [shape: f32[16,16], index: 1, kind: input, shape index: {}]   ;;  %s8905_s2 = inlined_call_operand.vmem [shape: f32[32,96], index: 2, kind: input, shape index: {}]   ;;  %s8906_s3 = inlined_call_operand.vmem [shape: f32[1,96], index: 3, kind: input, shape index: {}]   ;;  %s8907_s4 = inlined_call_operand.vmem [shape: f32[32,32], index: 4, kind: input, shape index: {}]   ;;  %s8908_s5 = inlined_call_operand.vmem [shape: f32[1,32], index: 5, kind: input, shape index: {}]   ;;  %s8909_s6 = inlined_call_operand.vmem [shape: f32[1,32], index: 6, kind: input, shape index: {}]   ;;  %s8910_s7 = inlined_call_operand.vmem [shape: f32[1,32], index: 7, kind: input, shape index: {}]   ;;  %s8911_s8 = inlined_call_operand.vmem [shape: f32[32,64], index: 8, kind: input, shape index: {}]   ;;  %s8912_s9 = inlined_call_operand.vmem [shape: f32[1,64], index: 9, kind: input, shape index: {}]   ;;  %s8913_s10 = inlined_call_operand.vmem [shape: f32[64,32], index: 10, kind: input, shape index: {}]   ;;  %s8914_s11 = inlined_call_operand.vmem [shape: f32[1,32], index: 11, kind: input, shape index: {}]   ;;  %s8915_s12 = inlined_call_operand.vmem [shape: f32[1,32], index: 12, kind: input, shape index: {}]   ;;  %s8916_s13 = inlined_call_operand.vmem [shape: f32[1,32], index: 13, kind: input, shape index: {}]   ;;  %s8917_s14 = inlined_call_operand.hbm [shape: f32[16,32], index: 14, kind: output, shape index: {}]  }
   0x1   :  { %20 = vsyncpa [#allocation6], 0 }
   0x2   :  { %21 = vsyncpa [#allocation4], 0  ;;  %s8404_s29 = smov [#allocation2]   ;;  %s8332_s17 = scalar_lea.hbm %s8903_s0, 256 }
   0x3   :  { %s27_s30 = sshll.u32 %s8404_s29, 4  ;;  %p8333_p0 = scmp.ne.s32.totalorder %s8903_s0, %s8332_s17  ;;  %s28_s30 = int_to_ptr.vmem [resolvable:$true] %s27_s30 }
   0x4   :  { %p8336_p1 = scmp.lt.u32.totalorder %s8332_s17, %s8903_s0 }
   0x6   :  { %p8338_p2 = pnand %p8336_p1, %p8333_p0 }
   0x8   :  { %8341 = shalt.err (!%p8338_p2)
}
   0x9   :  { %s8342_s22 = scalar_lea.vmem %s28_s30, 256  ;;  %p8347_p4 = scmp.lt.s32.totalorder %s28_s30, %s28_s30 }
   0xa   :  { %p8343_p3 = scmp.ne.s32.totalorder %s28_s30, %s8342_s22  ;;  %p8348_p5 = scmp.lt.s32.totalorder %s8342_s22, %s8342_s22 }
   0xc   :  { %p8349_p6 = por %p8348_p5, %p8347_p4 }
   0xe   :  { %p8350_p7 = pnand %p8349_p6, %p8343_p3 }
  0x10   :  { %8353 = shalt.err (!%p8350_p7)
}
  0x11   :  { %s8405_s23 = smov 128   ;;  %s8406_s24 = smov 8  }
  0x12   :  { %33 = dma.hbm_to_vmem [thread:$0]  %s8903_s0, 256, %s28_s30, [#allocation3], %s8405_s23, %s8405_s23, %s8406_s24  }
  0x13   :  { %s8407_s27 = smov [#allocation5]   ;;  %s8354_s16 = scalar_lea.hbm %s8904_s1, 256 }
  0x14   :  { %s39_s28 = sshll.u32 %s8407_s27, 4  ;;  %p8355_p8 = scmp.ne.s32.totalorder %s8904_s1, %s8354_s16  ;;  %s40_s28 = int_to_ptr.vmem [resolvable:$true] %s39_s28 }
  0x15   :  { %p8358_p9 = scmp.lt.u32.totalorder %s8354_s16, %s8904_s1 }
  0x17   :  { %p8360_p10 = pnand %p8358_p9, %p8355_p8 }
  0x19   :  { %8363 = shalt.err (!%p8360_p10)
}
  0x1a   :  { %s8364_s21 = scalar_lea.vmem %s40_s28, 256  ;;  %p8369_p12 = scmp.lt.s32.totalorder %s40_s28, %s40_s28 }
  0x1b   :  { %p8365_p11 = scmp.ne.s32.totalorder %s40_s28, %s8364_s21  ;;  %p8370_p13 = scmp.lt.s32.totalorder %s8364_s21, %s8364_s21 }
  0x1d   :  { %p8371_p0 = por %p8370_p13, %p8369_p12 }
  0x1f   :  { %p8372_p1 = pnand %p8371_p0, %p8365_p11 }
  0x21   :  { %8375 = shalt.err (!%p8372_p1)
}
  0x22   :  { %45 = dma.hbm_to_vmem [thread:$0]  %s8904_s1, 256, %s40_s28, [#allocation6], %s8405_s23, %s8405_s23, %s8406_s24  }
  0x23   :  { %8398 = dma.done.wait [#allocation3], 256  }
  0x24   :  { %8399 = vsyncadd [#allocation3], 4294967040 }
  0x25   :  { %8400 = dma.done.wait [#allocation6], 256  }
  0x26   :  { %8401 = vsyncadd [#allocation6], 4294967040  ;;  %vm91_vm0 = vcmask 261120   ;;  %v80_v0 = vld [vmem:[%s8905_s2] sm:$0xff]  ;;  %v81_v1 = vld [vmem:[%s8905_s2 + $0x8] sm:$0xff]  ;;  %vm632_vm1 = vcmask 64512  }
  0x27   :  { %v82_v2 = vld [vmem:[%s8905_s2 + $0x10] sm:$0xff]  ;;  %v99_v3 = vand.u32 4294901760, %v80_v0  ;;  %v102_v4 = vand.u32 4294901760, %v81_v1  ;;  %v83_v5 = vld [vmem:[%s8905_s2 + $0x18] sm:$0xff]  ;;  %v76_v7 = vld [vmem:[#allocation2] sm:$0xff]  ;;  %s8408_s17 = smov 88  }
  0x28   :  { %v105_v6 = vand.u32 4294901760, %v82_v2  ;;  %v77_v8 = vld [vmem:[#allocation2 + $0x8] sm:$0xff]  ;;  %v108_v9 = vand.u32 4294901760, %v83_v5  ;;  %v93_v10 = vsel %vm91_vm0, %v76_v7, 0  ;;  %v6688_v46 = vld [vmem:[%s8906_s3] ss:$0 sm:$0xff] }
  0x29   :  { %v96_v11 = vsel %vm91_vm0, %v77_v8, 0  ;;  %v8541_v12 = vpack.c.bf16 %v102_v4, %v99_v3  ;;  %v8543_v13 = vand.u32 4294901760, %v93_v10  ;;  %v189_v15 = vsub.f32 %v80_v0, %v99_v3  ;;  %s8409_s18 = smov 96   ;;  %s8410_s3 = smov 120  }
  0x2a   :  { %v8545_v14 = vand.u32 4294901760, %v96_v11  ;;  %v8547_v16 = vpack.c.bf16 %v108_v9, %v105_v6  ;;  %v196_v17 = vsub.f32 %v81_v1, %v102_v4  ;;  %v203_v18 = vsub.f32 %v82_v2, %v105_v6  ;;  %s8411_s19 = smov 64   ;;  %s8412_s20 = smov 56  }
  0x2b   :  { %v210_v19 = vsub.f32 %v83_v5, %v108_v9  ;;  %7705 = vmatprep.subr.bf16.mxu0 %v8541_v12  ;;  %v168_v20 = vsub.f32 %v93_v10, %v8543_v13  ;;  %v190_v22 = vand.u32 4294901760, %v189_v15  ;;  %vm1143_vm2 = vcmask 130048   ;;  %s8413_s21 = smov 80   ;;  %s8414_s0 = smov 112  }
  0x2c   :  { %v178_v21 = vsub.f32 %v96_v11, %v8545_v14  ;;  %7707 = vmatpush3.bf16.msra.mxu0 %v8541_v12  ;;  %v197_v23 = vand.u32 4294901760, %v196_v17  ;;  %v204_v24 = vand.u32 4294901760, %v203_v18  ;;  %v7720_v42 = vpack.c.bf16 %v196_v17, %v189_v15  ;;  %s8415_s30 = smov 48   ;;  %s8416_s22 = smov 72  }
  0x2d   :  { %v211_v25 = vand.u32 4294901760, %v210_v19  ;;  %7709 = vmatprep.subr.bf16.mxu0 %v8547_v16  ;;  %v169_v26 = vand.u32 4294901760, %v168_v20  ;;  %v191_v28 = vsub.f32 %v189_v15, %v190_v22  ;;  %v7724_v43 = vpack.c.bf16 %v210_v19, %v203_v18  ;;  %s8417_s25 = smov 104   ;;  %s8418_s26 = smov 40  }
  0x2e   :  { %v179_v27 = vand.u32 4294901760, %v178_v21  ;;  %v198_v29 = vsub.f32 %v196_v17, %v197_v23  ;;  %v205_v30 = vsub.f32 %v203_v18, %v204_v24  ;;  %v7736_v44 = vpack.c.bf16 %v197_v23, %v190_v22  ;;  %s8419_s27 = smov 16   ;;  %s8421_s29 = smov [#allocation7]  }
  0x2f   :  { %v212_v31 = vsub.f32 %v210_v19, %v211_v25  ;;  %v170_v32 = vsub.f32 %v168_v20, %v169_v26  ;;  %v192_v34 = vand.u32 4294901760, %v191_v28  ;;  %v7740_v45 = vpack.c.bf16 %v211_v25, %v204_v24  ;;  %s6675_s15 = sshll.u32 %s8421_s29, 4  ;;  %s6676_s15 = int_to_ptr.vmem [resolvable:$true] %s6675_s15 }
  0x30   :  { %v180_v33 = vsub.f32 %v178_v21, %v179_v27  ;;  %7711 = vmatpush3.bf16.msra.mxu0 %v8547_v16  ;;  %v199_v35 = vand.u32 4294901760, %v198_v29  ;;  %v206_v36 = vand.u32 4294901760, %v205_v30  ;;  %vm4878_vm3 = vcmask 195584   ;;  %s8376_s1 = scalar_lea.vmem %s6676_s15, 256  ;;  %p8381_p3 = scmp.lt.s32.totalorder %s6676_s15, %s6676_s15 }
  0x31   :  { %v213_v37 = vand.u32 4294901760, %v212_v31  ;;  %v171_v38 = vand.u32 4294901760, %v170_v32  ;;  %vm6035_vm4 = vcmask 523264   ;;  %p8377_p2 = scmp.ne.s32.totalorder %s6676_s15, %s8376_s1  ;;  %p8382_p4 = scmp.lt.s32.totalorder %s8376_s1, %s8376_s1 }
  0x32   :  { %v181_v39 = vand.u32 4294901760, %v180_v33  ;;  %v7712_v40 = vpack.c.bf16 %v199_v35, %v192_v34 }
  0x33   :  { %v7716_v41 = vpack.c.bf16 %v213_v37, %v206_v36  ;;  %7064 = vmatprep.mubr.f32.mxu0 %v171_v38  ;;  %p8383_p5 = por %p8382_p4, %p8381_p3 }
  0x34   :  { %7065 = vmatmul.mubr.f32.vlgmr.msra.gmra.mrb[0].mxu0 %v181_v39  ;;  %7713 = vmatprep.subr.bf16.mxu0 %v7712_v40 }
  0x35   :  { %7715 = vmatpush3.bf16.msra.mxu0 %v7712_v40  ;;  %7075 = vmatprep.mubr.f32.mxu0 %v8543_v13  ;;  %p8384_p6 = pnand %p8383_p5, %p8377_p2 }
  0x36   :  { %7717 = vmatprep.subr.bf16.mxu0 %v7716_v41 }
  0x39   :  { %7719 = vmatpush3.bf16.msra.mxu0 %v7716_v41 }
  0x3a   :  { %7721 = vmatprep.subr.bf16.mxu0 %v7720_v42 }
  0x3c   :  { %7076 = vmatmul.mubr.f32.vlgmr.msra.gmra.mrb[0].mxu0 %v8545_v14 }
  0x3d   :  { %7723 = vmatpush3.bf16.msra.mxu0 %v7720_v42  ;;  %7086 = vmatprep.mubr.f32.mxu0 %v168_v20 }
  0x3e   :  { %7725 = vmatprep.subr.bf16.mxu0 %v7724_v43 }
  0x41   :  { %7727 = vmatpush3.bf16.msra.mxu0 %v7724_v43 }
  0x42   :  { %7729 = vmatprep.subr.bf16.mxu0 %v8541_v12 }
  0x44   :  { %7087 = vmatmul.mubr.f32.vlgmr.msra.gmra.mrb[0].mxu0 %v178_v21 }
  0x45   :  { %7731 = vmatpush3.bf16.msra.mxu0 %v8541_v12  ;;  %7097 = vmatprep.mubr.f32.mxu0 %v169_v26 }
  0x46   :  { %7733 = vmatprep.subr.bf16.mxu0 %v8547_v16 }
  0x49   :  { %7735 = vmatpush3.bf16.msra.mxu0 %v8547_v16 }
  0x4a   :  { %7737 = vmatprep.subr.bf16.mxu0 %v7736_v44 }
  0x4c   :  { %7098 = vmatmul.mubr.f32.vlgmr.msra.gmra.mrb[0].mxu0 %v179_v27 }
  0x4d   :  { %7739 = vmatpush3.bf16.msra.mxu0 %v7736_v44  ;;  %7108 = vmatprep.mubr.f32.mxu0 %v8543_v13 }
  0x4e   :  { %7741 = vmatprep.subr.bf16.mxu0 %v7740_v45 }
  0x51   :  { %7743 = vmatpush3.bf16.msra.mxu0 %v7740_v45 }
  0x52   :  { %7745 = vmatprep.subr.bf16.mxu0 %v8541_v12 }
  0x54   :  { %7109 = vmatmul.mubr.f32.vlgmr.msra.gmra.mrb[0].mxu0 %v8545_v14 }
  0x55   :  { %7747 = vmatpush3.bf16.msra.mxu0 %v8541_v12  ;;  %7119 = vmatprep.mubr.f32.mxu0 %v8543_v13 }
  0x56   :  { %7749 = vmatprep.subr.bf16.mxu0 %v8547_v16 }
  0x59   :  { %7751 = vmatpush3.bf16.msra.mxu0 %v8547_v16 }
  0x5c   :  { %7120 = vmatmul.mubr.f32.vlgmr.msra.gmra.mrb[0].mxu0 %v8545_v14 }
 0x12f   :  { %v7121_v47 = vpop.f32.mrb[0].mxu0 }
 0x130   :  { %v8572_v48 = vadd.f32 %v7121_v47, %v6688_v46  ;;  %v616_v49 = vpop.f32.mrb[1].mxu0 }
 0x131   :  { %v8574_v50 = vadd.f32 %v6688_v46, %v616_v49 }
 0x132   :  { %1688 = vrot.lane.b32.xlu1 %v8572_v48, %s8408_s17  ;;  %v635_v57 = vsel %vm632_vm1, %v8572_v48, 0 }
 0x133   :  { %628 = vrot.lane.b32.xlu0 %v8574_v50, %s8409_s18  ;;  %v633_v51 = vsel %vm632_vm1, %v8574_v50, 0  ;;  %v8589_v59 = vand.u32 4294901760, %v635_v57 }
 0x134   :  { %v8580_v52 = vand.u32 4294901760, %v633_v51 }
 0x135   :  { %v719_v0 = vsub.f32 %v635_v57, %v8589_v59 }
 0x136   :  { %1686 = vrot.lane.b32.xlu1 %v8574_v50, %s8408_s17  ;;  %v709_v53 = vsub.f32 %v633_v51, %v8580_v52  ;;  %v8604_v51 = vld [vmem:[#allocation5 + $0x8] sm:$0xff] }
 0x137   :  { %630 = vrot.lane.b32.xlu0 %v8572_v48, %s8409_s18  ;;  %v720_v6 = vand.u32 4294901760, %v719_v0 }
 0x138   :  { %v710_v54 = vand.u32 4294901760, %v709_v53 }
 0x139   :  { %v721_v10 = vsub.f32 %v719_v0, %v720_v6 }
 0x13a   :  { %1684 = vrot.lane.b32.xlu1 %v8572_v48, %s8410_s3  ;;  %v711_v55 = vsub.f32 %v709_v53, %v710_v54 }
 0x13b   :  { %1682 = vrot.lane.b32.xlu0 %v8574_v50, %s8410_s3  ;;  %v722_v13 = vand.u32 4294901760, %v721_v10 }
 0x13c   :  { %v712_v56 = vand.u32 4294901760, %v711_v55 }
 0x13e   :  { %7126 = vmatprep.mubr.f32.mxu1 %v712_v56 }
 0x1a4   :  { %v1689_v16 = vpop.permute.xlu1 %1688 }
 0x1a5   :  { %v629_v58 = vpop.permute.xlu0 %628  ;;  %v1696_v21 = vsel %vm632_vm1, %v1689_v16, 0 }
 0x1a6   :  { %v637_v60 = vsel %vm632_vm1, %v629_v58, 0  ;;  %v1702_v24 = vand.u32 4294901760, %v1696_v21 }
 0x1a7   :  { %v642_v61 = vand.u32 4294901760, %v637_v60 }
 0x1a8   :  { %v1687_v17 = vpop.permute.xlu1 %1686  ;;  %v1794_v28 = vsub.f32 %v1696_v21, %v1702_v24 }
 0x1a9   :  { %v730_v62 = vsub.f32 %v637_v60, %v642_v61  ;;  %v631_v63 = vpop.permute.xlu0 %630  ;;  %v1694_v19 = vsel %vm632_vm1, %v1687_v17, 0 }
 0x1aa   :  { %v639_v1 = vsel %vm632_vm1, %v631_v63, 0  ;;  %v1699_v22 = vand.u32 4294901760, %v1694_v19  ;;  %v1795_v32 = vand.u32 4294901760, %v1794_v28 }
 0x1ab   :  { %v731_v2 = vand.u32 4294901760, %v730_v62  ;;  %v645_v3 = vand.u32 4294901760, %v639_v1 }
 0x1ac   :  { %v1787_v26 = vsub.f32 %v1694_v19, %v1699_v22  ;;  %v1685_v27 = vpop.permute.xlu1 %1684  ;;  %v7800_v35 = vpack.c.bf16 %v1702_v24, %v1699_v22  ;;  %v1796_v37 = vsub.f32 %v1794_v28, %v1795_v32 }
 0x1ad   :  { %v7752_v4 = vpack.c.bf16 %v645_v3, %v642_v61  ;;  %v737_v5 = vsub.f32 %v639_v1, %v645_v3  ;;  %v732_v7 = vsub.f32 %v730_v62, %v731_v2  ;;  %v1683_v20 = vpop.permute.xlu0 %1682  ;;  %v1692_v29 = vsel %vm632_vm1, %v1685_v27, 0 }
 0x1ae   :  { %v1690_v23 = vsel %vm632_vm1, %v1683_v20, 0  ;;  %v1788_v31 = vand.u32 4294901760, %v1787_v26  ;;  %v1775_v33 = vand.u32 4294901760, %v1692_v29  ;;  %v1797_v42 = vand.u32 4294901760, %v1796_v37 }
 0x1af   :  { %v738_v8 = vand.u32 4294901760, %v737_v5  ;;  %7753 = vmatprep.subr.bf16.mxu1 %v7752_v4  ;;  %v733_v11 = vand.u32 4294901760, %v732_v7  ;;  %v7760_v15 = vpack.c.bf16 %v737_v5, %v730_v62  ;;  %v1765_v25 = vand.u32 4294901760, %v1690_v23 }
 0x1b0   :  { %7755 = vmatpush3.bf16.xpose.msra.mxu1 %v7752_v4  ;;  %v1789_v36 = vsub.f32 %v1787_v26, %v1788_v31  ;;  %v1776_v38 = vsub.f32 %v1692_v29, %v1775_v33  ;;  %v7808_v47 = vpack.c.bf16 %v1794_v28, %v1787_v26  ;;  %v7816_v49 = vpack.c.bf16 %v1795_v32, %v1788_v31 }
 0x1b1   :  { %v739_v9 = vsub.f32 %v737_v5, %v738_v8  ;;  %v7768_v18 = vpack.c.bf16 %v738_v8, %v731_v2  ;;  %v1766_v30 = vsub.f32 %v1690_v23, %v1765_v25 }
 0x1b2   :  { %v1790_v40 = vand.u32 4294901760, %v1789_v36  ;;  %v1777_v41 = vand.u32 4294901760, %v1776_v38 }
 0x1b3   :  { %v740_v12 = vand.u32 4294901760, %v739_v9  ;;  %v1767_v34 = vand.u32 4294901760, %v1766_v30 }
 0x1b4   :  { %v7804_v44 = vpack.c.bf16 %v1797_v42, %v1790_v40  ;;  %v1778_v45 = vsub.f32 %v1776_v38, %v1777_v41 }
 0x1b5   :  { %v7756_v14 = vpack.c.bf16 %v740_v12, %v733_v11  ;;  %v1768_v39 = vsub.f32 %v1766_v30, %v1767_v34 }
 0x1b6   :  { %v1779_v46 = vand.u32 4294901760, %v1778_v45 }
 0x1b7   :  { %7127 = vmatmul.mubr.f32.vlgmr.msra.gmra.mrb[0].mxu1 %v722_v13  ;;  %7757 = vmatprep.subr.bf16.mxu1 %v7756_v14  ;;  %v1769_v43 = vand.u32 4294901760, %v1768_v39 }
 0x1b8   :  { %7759 = vmatpush3.bf16.xpose.msra.mxu1 %v7756_v14  ;;  %7133 = vmatprep.mubr.f32.mxu1 %v8580_v52 }
 0x1b9   :  { %7761 = vmatprep.subr.bf16.mxu1 %v7760_v15 }
 0x1bf   :  { %7134 = vmatmul.mubr.f32.vlgmr.msra.gmra.mrb[0].mxu1 %v8589_v59 }
 0x1c0   :  { %7763 = vmatpush3.bf16.xpose.msra.mxu1 %v7760_v15  ;;  %7140 = vmatprep.mubr.f32.mxu1 %v709_v53 }
 0x1c1   :  { %7765 = vmatprep.subr.bf16.mxu1 %v7752_v4 }
 0x1c7   :  { %7141 = vmatmul.mubr.f32.vlgmr.msra.gmra.mrb[0].mxu1 %v719_v0 }
 0x1c8   :  { %7767 = vmatpush3.bf16.xpose.msra.mxu1 %v7752_v4  ;;  %7147 = vmatprep.mubr.f32.mxu1 %v710_v54 }
 0x1c9   :  { %7769 = vmatprep.subr.bf16.mxu1 %v7768_v18 }
 0x1cf   :  { %7148 = vmatmul.mubr.f32.vlgmr.msra.gmra.mrb[0].mxu1 %v720_v6 }
 0x1d0   :  { %7771 = vmatpush3.bf16.xpose.msra.mxu1 %v7768_v18  ;;  %7154 = vmatprep.mubr.f32.mxu1 %v8580_v52 }
 0x1d1   :  { %7773 = vmatprep.subr.bf16.mxu1 %v7752_v4 }
 0x1d7   :  { %7155 = vmatmul.mubr.f32.vlgmr.msra.gmra.mrb[0].mxu1 %v8589_v59 }
 0x1d8   :  { %7775 = vmatpush3.bf16.xpose.msra.mxu1 %v7752_v4  ;;  %7161 = vmatprep.mubr.f32.mxu1 %v8580_v52  ;;  %v8606_v52 = vld [vmem:[#allocation5] sm:$0xff] }
 0x1d9   :  { %7801 = vmatprep.subr.bf16.mxu1 %v7800_v35 }
 0x1df   :  { %7162 = vmatmul.mubr.f32.vlgmr.msra.gmra.mrb[0].mxu1 %v8589_v59 }
 0x1e0   :  { %7803 = vmatpush3.bf16.xpose.msra.mxu1 %v7800_v35  ;;  %7210 = vmatprep.mubr.f32.mxu1 %v1769_v43 }
 0x1e1   :  { %7805 = vmatprep.subr.bf16.mxu1 %v7804_v44 }
 0x1e7   :  { %7211 = vmatmul.mubr.f32.vlgmr.msra.gmra.mrb[2].mxu1 %v1779_v46 }
 0x1e8   :  { %7807 = vmatpush3.bf16.xpose.msra.mxu1 %v7804_v44  ;;  %7217 = vmatprep.mubr.f32.mxu1 %v1765_v25 }
 0x1e9   :  { %7809 = vmatprep.subr.bf16.mxu1 %v7808_v47 }
 0x1ef   :  { %7218 = vmatmul.mubr.f32.vlgmr.msra.gmra.mrb[2].mxu1 %v1775_v33 }
 0x1f0   :  { %7811 = vmatpush3.bf16.xpose.msra.mxu1 %v7808_v47  ;;  %7224 = vmatprep.mubr.f32.mxu1 %v1766_v30 }
 0x1f1   :  { %7813 = vmatprep.subr.bf16.mxu1 %v7800_v35 }
 0x1f7   :  { %7225 = vmatmul.mubr.f32.vlgmr.msra.gmra.mrb[2].mxu1 %v1776_v38 }
 0x1f8   :  { %7815 = vmatpush3.bf16.xpose.msra.mxu1 %v7800_v35  ;;  %7231 = vmatprep.mubr.f32.mxu1 %v1767_v34 }
 0x1f9   :  { %7817 = vmatprep.subr.bf16.mxu1 %v7816_v49 }
 0x1ff   :  { %7232 = vmatmul.mubr.f32.vlgmr.msra.gmra.mrb[2].mxu1 %v1777_v41 }
 0x200   :  { %7819 = vmatpush3.bf16.xpose.msra.mxu1 %v7816_v49  ;;  %7238 = vmatprep.mubr.f32.mxu1 %v1765_v25 }
 0x201   :  { %7821 = vmatprep.subr.bf16.mxu1 %v7800_v35 }
 0x207   :  { %7239 = vmatmul.mubr.f32.vlgmr.msra.gmra.mrb[2].mxu1 %v1775_v33 }
 0x208   :  { %7823 = vmatpush3.bf16.xpose.msra.mxu1 %v7800_v35  ;;  %7245 = vmatprep.mubr.f32.mxu1 %v1765_v25 }
 0x20f   :  { %7246 = vmatmul.mubr.f32.vlgmr.msra.gmra.mrb[2].mxu1 %v1775_v33 }
 0x2b2   :  { %v7163_v53 = vpop.f32.mrb[0].mxu1 }
 0x2b3   :  { %v8138_v54 = vadd.f32 %v7163_v53, %v8604_v51  ;;  %v1133_v55 = vpop.f32.mrb[1].mxu1 }
 0x2b4   :  { %v8139_v56 = vadd.f32 %v1133_v55, %v8606_v52 }
 0x2b5   :  { %v1147_v57 = vsel %vm1143_vm2, %v8138_v54, -inf }
 0x2b6   :  { %1148 = vmax.xlane.f32.xlu1 %v1147_v57  ;;  %v1144_v58 = vsel %vm1143_vm2, %v8139_v56, -inf }
 0x2b7   :  { %1145 = vmax.xlane.f32.xlu0 %v1144_v58 }
 0x2e2   :  { %v7247_v59 = vpop.f32.mrb[2].mxu1 }
 0x2e3   :  { %v2190_v60 = vpop.f32.mrb[3].mxu1  ;;  %v8140_v62 = vadd.f32 %v7247_v59, %v8604_v51 }
 0x2e4   :  { %v8141_v61 = vadd.f32 %v2190_v60, %v8606_v52 }
 0x2e5   :  { %v2203_v0 = vsel %vm1143_vm2, %v8140_v62, -inf }
 0x2e6   :  { %v2200_v63 = vsel %vm1143_vm2, %v8141_v61, -inf }
 0x2e7   :  { %2201 = vmax.xlane.f32.xlu0 %v2200_v63 }
 0x2eb   :  { %2204 = vmax.xlane.f32.xlu0 %v2203_v0 }
 0x343   :  { %v1149_v1 = vpop.xlane.xlu1 %1148 }
 0x344   :  { %v1151_v2 = vsub.f32 %v8138_v54, %v1149_v1  ;;  %v1146_v3 = vpop.xlane.xlu0 %1145 }
 0x345   :  { %v1150_v4 = vsub.f32 %v8139_v56, %v1146_v3 }
 0x346   :  { %v1154_v5 = vmul.f32 1.442695, %v1151_v2 }
 0x347   :  { %v1152_v6 = vmul.f32 1.442695, %v1150_v4 }
 0x348   :  { %8290 = vpow2.f32 %v1154_v5 }
 0x349   :  { %8292 = vpow2.f32 %v1152_v6 }
 0x352   :  { %v8291_v7 = vpop.eup %8290 }
 0x353   :  { %v8293_v8 = vpop.eup %8292  ;;  %v1159_v9 = vsel %vm1143_vm2, %v8291_v7, 0.0 }
 0x354   :  { %1160 = vadd.xlane.f32.xlu0 %v1159_v9  ;;  %v1156_v10 = vsel %vm1143_vm2, %v8293_v8, 0.0 }
 0x355   :  { %1157 = vadd.xlane.f32.xlu1 %v1156_v10 }
 0x366   :  { %1168 = vrot.lane.b32.xlu1 %v8574_v50, %s8411_s19 }
 0x36a   :  { %1170 = vrot.lane.b32.xlu0 %v8572_v48, %s8411_s19 }
 0x374   :  { %v2202_v11 = vpop.xlane.xlu0 %2201 }
 0x375   :  { %v2206_v12 = vsub.f32 %v8141_v61, %v2202_v11 }
 0x377   :  { %v2208_v13 = vmul.f32 1.442695, %v2206_v12 }
 0x378   :  { %v2205_v14 = vpop.xlane.xlu0 %2204 }
 0x379   :  { %v2207_v15 = vsub.f32 %v8140_v62, %v2205_v14  ;;  %8294 = vpow2.f32 %v2208_v13 }
 0x37b   :  { %v2210_v16 = vmul.f32 1.442695, %v2207_v15 }
 0x37d   :  { %8296 = vpow2.f32 %v2210_v16 }
 0x383   :  { %v8620_v17 = vpop.eup %8294 }
 0x384   :  { %v2212_v20 = vsel %vm1143_vm2, %v8620_v17, 0.0 }
 0x387   :  { %v8622_v18 = vpop.eup %8296 }
 0x388   :  { %v2215_v19 = vsel %vm1143_vm2, %v8622_v18, 0.0 }
 0x389   :  { %2216 = vadd.xlane.f32.xlu0 %v2215_v19 }
 0x38a   :  { %2213 = vadd.xlane.f32.xlu1 %v2212_v20 }
 0x39b   :  { %2224 = vrot.lane.b32.xlu1 %v8574_v50, %s8412_s20 }
 0x39f   :  { %2742 = vrot.lane.b32.xlu1 %v8574_v50, %s8413_s21  ;;  %2226 = vrot.lane.b32.xlu0 %v8572_v48, %s8412_s20 }
 0x3a3   :  { %2744 = vrot.lane.b32.xlu1 %v8572_v48, %s8413_s21  ;;  %2738 = vrot.lane.b32.xlu0 %v8574_v50, %s8414_s0 }
 0x3a7   :  { %2740 = vrot.lane.b32.xlu1 %v8572_v48, %s8414_s0 }
 0x3e1   :  { %v1161_v21 = vpop.xlane.xlu0 %1160 }
 0x3e2   :  { %8298 = vrcp.f32 %v1161_v21  ;;  %v1158_v22 = vpop.xlane.xlu1 %1157 }
 0x3e3   :  { %8300 = vrcp.f32 %v1158_v22 }
 0x3e5   :  { %v1171_v23 = vpop.permute.xlu0 %1170 }
 0x3e6   :  { %v1184_v24 = vand.u32 4294901760, %v1171_v23  ;;  %v1169_v25 = vpop.permute.xlu1 %1168 }
 0x3e7   :  { %v1181_v26 = vand.u32 4294901760, %v1169_v25 }
 0x3e8   :  { %v1276_v27 = vsub.f32 %v1171_v23, %v1184_v24 }
 0x3e9   :  { %v7776_v28 = vpack.c.bf16 %v1184_v24, %v1181_v26  ;;  %v1269_v29 = vsub.f32 %v1169_v25, %v1181_v26 }
 0x3ea   :  { %v1277_v30 = vand.u32 4294901760, %v1276_v27 }
 0x3eb   :  { %v1270_v31 = vand.u32 4294901760, %v1269_v29  ;;  %7777 = vmatprep.subr.bf16.mxu0 %v7776_v28  ;;  %v7784_v57 = vpack.c.bf16 %v1276_v27, %v1269_v29 }
 0x3ec   :  { %v8299_v32 = vpop.eup %8298  ;;  %v1278_v33 = vsub.f32 %v1276_v27, %v1277_v30  ;;  %7779 = vmatpush3.bf16.msra.mxu0 %v7776_v28 }
 0x3ed   :  { %v8301_v34 = vpop.eup %8300  ;;  %v1167_v35 = vmul.f32 %v8299_v32, %v8291_v7  ;;  %v1271_v36 = vsub.f32 %v1269_v29, %v1270_v31  ;;  %v7792_v58 = vpack.c.bf16 %v1277_v30, %v1270_v31 }
 0x3ee   :  { %v1166_v37 = vmul.f32 %v8301_v34, %v8293_v8  ;;  %v1279_v38 = vand.u32 4294901760, %v1278_v33 }
 0x3ef   :  { %v1272_v39 = vand.u32 4294901760, %v1271_v36  ;;  %v1178_v40 = vsel %vm1143_vm2, %v1167_v35, 0 }
 0x3f0   :  { %v1175_v41 = vsel %vm1143_vm2, %v1166_v37, 0  ;;  %v1257_v42 = vand.u32 4294901760, %v1178_v40 }
 0x3f1   :  { %v7780_v43 = vpack.c.bf16 %v1279_v38, %v1272_v39  ;;  %v1247_v44 = vand.u32 4294901760, %v1175_v41 }
 0x3f2   :  { %v1258_v45 = vsub.f32 %v1178_v40, %v1257_v42 }
 0x3f3   :  { %7781 = vmatprep.subr.bf16.mxu0 %v7780_v43  ;;  %v1248_v46 = vsub.f32 %v1175_v41, %v1247_v44 }
 0x3f4   :  { %v1259_v47 = vand.u32 4294901760, %v1258_v45 }
 0x3f5   :  { %v1249_v49 = vand.u32 4294901760, %v1248_v46 }
 0x3f6   :  { %v1260_v53 = vsub.f32 %v1258_v45, %v1259_v47 }
 0x3f7   :  { %v1250_v54 = vsub.f32 %v1248_v46, %v1249_v49 }
 0x3f8   :  { %v1261_v56 = vand.u32 4294901760, %v1260_v53 }
 0x3f9   :  { %v1251_v55 = vand.u32 4294901760, %v1250_v54 }
 0x3fb   :  { %7168 = vmatprep.mubr.f32.mxu0 %v1251_v55 }
 0x3fc   :  { %7169 = vmatmul.mubr.f32.vlgmr.msra.gmra.mrb[2].mxu0 %v1261_v56 }
 0x3fd   :  { %7783 = vmatpush3.bf16.msra.mxu0 %v7780_v43  ;;  %7175 = vmatprep.mubr.f32.mxu0 %v1247_v44 }
 0x3fe   :  { %7785 = vmatprep.subr.bf16.mxu0 %v7784_v57 }
 0x404   :  { %7176 = vmatmul.mubr.f32.vlgmr.msra.gmra.mrb[2].mxu0 %v1257_v42 }
 0x405   :  { %7787 = vmatpush3.bf16.msra.mxu0 %v7784_v57  ;;  %7182 = vmatprep.mubr.f32.mxu0 %v1248_v46 }
 0x406   :  { %7789 = vmatprep.subr.bf16.mxu0 %v7776_v28 }
 0x40c   :  { %7183 = vmatmul.mubr.f32.vlgmr.msra.gmra.mrb[2].mxu0 %v1258_v45 }
 0x40d   :  { %7791 = vmatpush3.bf16.msra.mxu0 %v7776_v28  ;;  %7189 = vmatprep.mubr.f32.mxu0 %v1249_v49 }
 0x40e   :  { %7793 = vmatprep.subr.bf16.mxu0 %v7792_v58 }
 0x414   :  { %7190 = vmatmul.mubr.f32.vlgmr.msra.gmra.mrb[2].mxu0 %v1259_v47 }
 0x415   :  { %7795 = vmatpush3.bf16.msra.mxu0 %v7792_v58  ;;  %7196 = vmatprep.mubr.f32.mxu0 %v1247_v44 }
 0x416   :  { %7797 = vmatprep.subr.bf16.mxu0 %v7776_v28  ;;  %v2217_v59 = vpop.xlane.xlu0 %2216 }
 0x417   :  { %8302 = vrcp.f32 %v2217_v59  ;;  %v2214_v60 = vpop.xlane.xlu1 %2213 }
 0x418   :  { %8304 = vrcp.f32 %v2214_v60 }
 0x41a   :  { %v2227_v61 = vpop.permute.xlu0 %2226 }
 0x41b   :  { %v2240_v62 = vand.u32 4294901760, %v2227_v61  ;;  %v2225_v63 = vpop.permute.xlu1 %2224 }
 0x41c   :  { %v2237_v0 = vand.u32 4294901760, %v2225_v63  ;;  %7197 = vmatmul.mubr.f32.vlgmr.msra.gmra.mrb[2].mxu0 %v1257_v42 }
 0x41d   :  { %v2332_v1 = vsub.f32 %v2227_v61, %v2240_v62  ;;  %7799 = vmatpush3.bf16.msra.mxu0 %v7776_v28  ;;  %7203 = vmatprep.mubr.f32.mxu0 %v1247_v44 }
 0x41e   :  { %v8636_v2 = vpack.c.bf16 %v2240_v62, %v2237_v0  ;;  %v2325_v3 = vsub.f32 %v2225_v63, %v2237_v0  ;;  %v2739_v31 = vpop.permute.xlu0 %2738 }
 0x41f   :  { %v2333_v4 = vand.u32 4294901760, %v2332_v1  ;;  %v2743_v28 = vpop.permute.xlu1 %2742  ;;  %v2746_v33 = vsel %vm632_vm1, %v2739_v31, 0 }
 0x420   :  { %v2326_v5 = vand.u32 4294901760, %v2325_v3  ;;  %7825 = vmatprep.subr.bf16.mxu0 %v8636_v2  ;;  %v7832_v27 = vpack.c.bf16 %v2332_v1, %v2325_v3  ;;  %v2750_v34 = vsel %vm632_vm1, %v2743_v28, 0  ;;  %v2821_v36 = vand.u32 4294901760, %v2746_v33 }
 0x421   :  { %v8303_v6 = vpop.eup %8302  ;;  %v2334_v7 = vsub.f32 %v2332_v1, %v2333_v4  ;;  %v2755_v37 = vand.u32 4294901760, %v2750_v34 }
 0x422   :  { %v8305_v8 = vpop.eup %8304  ;;  %v2223_v9 = vmul.f32 %v8303_v6, %v8622_v18  ;;  %v2327_v10 = vsub.f32 %v2325_v3, %v2326_v5  ;;  %v7840_v30 = vpack.c.bf16 %v2333_v4, %v2326_v5  ;;  %v2822_v40 = vsub.f32 %v2746_v33, %v2821_v36 }
 0x423   :  { %v2222_v11 = vmul.f32 %v8305_v8, %v8620_v17  ;;  %v2335_v12 = vand.u32 4294901760, %v2334_v7  ;;  %v2745_v29 = vpop.permute.xlu1 %2744  ;;  %v2843_v41 = vsub.f32 %v2750_v34, %v2755_v37 }
 0x424   :  { %7204 = vmatmul.mubr.f32.vlgmr.msra.gmra.mrb[2].mxu0 %v1257_v42  ;;  %v2328_v13 = vand.u32 4294901760, %v2327_v10  ;;  %v2234_v14 = vsel %vm1143_vm2, %v2223_v9, 0  ;;  %v2752_v32 = vsel %vm632_vm1, %v2745_v29, 0  ;;  %v2823_v44 = vand.u32 4294901760, %v2822_v40 }
 0x425   :  { %7827 = vmatpush3.bf16.msra.mxu0 %v8636_v2  ;;  %v2231_v15 = vsel %vm1143_vm2, %v2222_v11, 0  ;;  %v2313_v16 = vand.u32 4294901760, %v2234_v14  ;;  %v2758_v35 = vand.u32 4294901760, %v2752_v32  ;;  %v2844_v45 = vand.u32 4294901760, %v2843_v41 }
 0x426   :  { %v7828_v19 = vpack.c.bf16 %v2335_v12, %v2328_v13  ;;  %v2303_v20 = vand.u32 4294901760, %v2231_v15  ;;  %v2824_v55 = vsub.f32 %v2822_v40, %v2823_v44 }
 0x427   :  { %v2314_v21 = vsub.f32 %v2234_v14, %v2313_v16  ;;  %v2850_v38 = vsub.f32 %v2752_v32, %v2758_v35  ;;  %v2741_v39 = vpop.permute.xlu1 %2740  ;;  %v7848_v47 = vpack.c.bf16 %v2758_v35, %v2755_v37  ;;  %v2845_v53 = vsub.f32 %v2843_v41, %v2844_v45 }
 0x428   :  { %7829 = vmatprep.subr.bf16.mxu0 %v7828_v19  ;;  %v2304_v22 = vsub.f32 %v2231_v15, %v2303_v20  ;;  %v2748_v42 = vsel %vm632_vm1, %v2741_v39, 0  ;;  %v2825_v58 = vand.u32 4294901760, %v2824_v55 }
 0x429   :  { %v2315_v23 = vand.u32 4294901760, %v2314_v21  ;;  %v2851_v43 = vand.u32 4294901760, %v2850_v38  ;;  %v2831_v46 = vand.u32 4294901760, %v2748_v42  ;;  %v2846_v59 = vand.u32 4294901760, %v2845_v53 }
 0x42a   :  { %v2305_v18 = vand.u32 4294901760, %v2304_v22  ;;  %v7856_v63 = vpack.c.bf16 %v2850_v38, %v2843_v41 }
 0x42b   :  { %v2316_v24 = vsub.f32 %v2314_v21, %v2315_v23  ;;  %v2852_v49 = vsub.f32 %v2850_v38, %v2851_v43  ;;  %v2832_v54 = vsub.f32 %v2748_v42, %v2831_v46  ;;  %v7864_v0 = vpack.c.bf16 %v2851_v43, %v2844_v45 }
 0x42c   :  { %v2306_v25 = vsub.f32 %v2304_v22, %v2305_v18 }
 0x42d   :  { %v2317_v26 = vand.u32 4294901760, %v2316_v24  ;;  %v2853_v56 = vand.u32 4294901760, %v2852_v49  ;;  %v2833_v57 = vand.u32 4294901760, %v2832_v54 }
 0x42e   :  { %v2307_v17 = vand.u32 4294901760, %v2306_v25 }
 0x42f   :  { %v7852_v60 = vpack.c.bf16 %v2853_v56, %v2846_v59  ;;  %v2834_v61 = vsub.f32 %v2832_v54, %v2833_v57 }
 0x430   :  { %7252 = vmatprep.mubr.f32.mxu0 %v2307_v17 }
 0x431   :  { %7253 = vmatmul.mubr.f32.vlgmr.msra.gmra.mrb[4].mxu0 %v2317_v26  ;;  %v2835_v62 = vand.u32 4294901760, %v2834_v61 }
 0x432   :  { %7831 = vmatpush3.bf16.msra.mxu0 %v7828_v19  ;;  %7259 = vmatprep.mubr.f32.mxu0 %v2303_v20 }
 0x433   :  { %7833 = vmatprep.subr.bf16.mxu0 %v7832_v27 }
 0x439   :  { %7260 = vmatmul.mubr.f32.vlgmr.msra.gmra.mrb[4].mxu0 %v2313_v16 }
 0x43a   :  { %7835 = vmatpush3.bf16.msra.mxu0 %v7832_v27  ;;  %7266 = vmatprep.mubr.f32.mxu0 %v2304_v22 }
 0x43b   :  { %7837 = vmatprep.subr.bf16.mxu0 %v8636_v2 }
 0x441   :  { %7267 = vmatmul.mubr.f32.vlgmr.msra.gmra.mrb[4].mxu0 %v2314_v21 }
 0x442   :  { %7839 = vmatpush3.bf16.msra.mxu0 %v8636_v2  ;;  %7273 = vmatprep.mubr.f32.mxu0 %v2305_v18 }
 0x443   :  { %7841 = vmatprep.subr.bf16.mxu0 %v7840_v30 }
 0x449   :  { %7274 = vmatmul.mubr.f32.vlgmr.msra.gmra.mrb[4].mxu0 %v2315_v23 }
 0x44a   :  { %7843 = vmatpush3.bf16.msra.mxu0 %v7840_v30  ;;  %7280 = vmatprep.mubr.f32.mxu0 %v2303_v20 }
 0x44b   :  { %7845 = vmatprep.subr.bf16.mxu0 %v8636_v2 }
 0x451   :  { %7281 = vmatmul.mubr.f32.vlgmr.msra.gmra.mrb[4].mxu0 %v2313_v16 }
 0x452   :  { %7847 = vmatpush3.bf16.msra.mxu0 %v8636_v2  ;;  %7287 = vmatprep.mubr.f32.mxu0 %v2303_v20 }
 0x453   :  { %7849 = vmatprep.subr.bf16.mxu0 %v7848_v47 }
 0x459   :  { %7288 = vmatmul.mubr.f32.vlgmr.msra.gmra.mrb[4].mxu0 %v2313_v16 }
 0x45a   :  { %7294 = vmatprep.mubr.f32.mxu0 %v2825_v58 }
 0x45b   :  { %7851 = vmatpush3.bf16.xpose.msra.mxu0 %v7848_v47 }
 0x45c   :  { %7853 = vmatprep.subr.bf16.mxu0 %v7852_v60 }
 0x462   :  { %7295 = vmatmul.mubr.f32.vlgmr.msra.gmra.mrb[6].mxu0 %v2835_v62 }
 0x463   :  { %7855 = vmatpush3.bf16.xpose.msra.mxu0 %v7852_v60  ;;  %7301 = vmatprep.mubr.f32.mxu0 %v2821_v36 }
 0x464   :  { %7857 = vmatprep.subr.bf16.mxu0 %v7856_v63 }
 0x46a   :  { %7302 = vmatmul.mubr.f32.vlgmr.msra.gmra.mrb[6].mxu0 %v2831_v46 }
 0x46b   :  { %7859 = vmatpush3.bf16.xpose.msra.mxu0 %v7856_v63  ;;  %7308 = vmatprep.mubr.f32.mxu0 %v2822_v40 }
 0x46c   :  { %7861 = vmatprep.subr.bf16.mxu0 %v7848_v47 }
 0x472   :  { %7309 = vmatmul.mubr.f32.vlgmr.msra.gmra.mrb[6].mxu0 %v2832_v54 }
 0x473   :  { %7863 = vmatpush3.bf16.xpose.msra.mxu0 %v7848_v47  ;;  %7315 = vmatprep.mubr.f32.mxu0 %v2823_v44 }
 0x474   :  { %7865 = vmatprep.subr.bf16.mxu0 %v7864_v0 }
 0x47a   :  { %7316 = vmatmul.mubr.f32.vlgmr.msra.gmra.mrb[6].mxu0 %v2833_v57 }
 0x47b   :  { %7867 = vmatpush3.bf16.xpose.msra.mxu0 %v7864_v0  ;;  %7322 = vmatprep.mubr.f32.mxu0 %v2821_v36 }
 0x47c   :  { %7869 = vmatprep.subr.bf16.mxu0 %v7848_v47 }
 0x482   :  { %7323 = vmatmul.mubr.f32.vlgmr.msra.gmra.mrb[6].mxu0 %v2831_v46 }
 0x483   :  { %7871 = vmatpush3.bf16.xpose.msra.mxu0 %v7848_v47  ;;  %7329 = vmatprep.mubr.f32.mxu0 %v2821_v36 }
 0x48a   :  { %7330 = vmatmul.mubr.f32.vlgmr.msra.gmra.mrb[6].mxu0 %v2831_v46 }
 0x4f7   :  { %v8652_v1 = vpop.f32.mrb[2].mxu0 }
 0x4f8   :  { %v8654_v2 = vpop.f32.mrb[3].mxu0 }
 0x52c   :  { %v8656_v3 = vpop.f32.mrb[4].mxu0 }
 0x52d   :  { %v8658_v4 = vpop.f32.mrb[5].mxu0 }
 0x55d   :  { %v7331_v5 = vpop.f32.mrb[6].mxu0 }
 0x55e   :  { %v8142_v6 = vadd.f32 %v7331_v5, %v8604_v51  ;;  %v3246_v7 = vpop.f32.mrb[7].mxu0 }
 0x55f   :  { %v8143_v8 = vadd.f32 %v3246_v7, %v8606_v52 }
 0x560   :  { %v3259_v9 = vsel %vm1143_vm2, %v8142_v6, -inf }
 0x561   :  { %3260 = vmax.xlane.f32.xlu1 %v3259_v9  ;;  %v3256_v10 = vsel %vm1143_vm2, %v8143_v8, -inf }
 0x562   :  { %3257 = vmax.xlane.f32.xlu0 %v3256_v10 }
 0x572   :  { %3280 = vrot.lane.b32.xlu1 %v8574_v50, %s8415_s30 }
 0x576   :  { %3798 = vrot.lane.b32.xlu1 %v8574_v50, %s8416_s22 }
 0x57a   :  { %3800 = vrot.lane.b32.xlu1 %v8572_v48, %s8416_s22 }
 0x57e   :  { %3796 = vrot.lane.b32.xlu1 %v8572_v48, %s8417_s25 }
 0x5ee   :  { %v3261_v11 = vpop.xlane.xlu1 %3260 }
 0x5ef   :  { %v3263_v12 = vsub.f32 %v8142_v6, %v3261_v11  ;;  %v3258_v13 = vpop.xlane.xlu0 %3257 }
 0x5f0   :  { %v3262_v14 = vsub.f32 %v8143_v8, %v3258_v13 }
 0x5f1   :  { %v3266_v15 = vmul.f32 1.442695, %v3263_v12 }
 0x5f2   :  { %v3264_v16 = vmul.f32 1.442695, %v3262_v14  ;;  %v3281_v23 = vpop.permute.xlu1 %3280 }
 0x5f3   :  { %8306 = vpow2.f32 %v3266_v15  ;;  %v3293_v24 = vand.u32 4294901760, %v3281_v23 }
 0x5f4   :  { %8308 = vpow2.f32 %v3264_v16 }
 0x5f5   :  { %v3381_v17 = vsub.f32 %v3281_v23, %v3293_v24 }
 0x5f6   :  { %v3799_v58 = vpop.permute.xlu1 %3798 }
 0x5f7   :  { %v3382_v27 = vand.u32 4294901760, %v3381_v17  ;;  %v3806_v63 = vsel %vm632_vm1, %v3799_v58, 0 }
 0x5f8   :  { %v3811_v6 = vand.u32 4294901760, %v3806_v63 }
 0x5f9   :  { %v3383_v33 = vsub.f32 %v3381_v17, %v3382_v27 }
 0x5fa   :  { %v3801_v59 = vpop.permute.xlu1 %3800  ;;  %v3899_v10 = vsub.f32 %v3806_v63, %v3811_v6 }
 0x5fb   :  { %v3384_v40 = vand.u32 4294901760, %v3383_v33  ;;  %v3808_v62 = vsel %vm632_vm1, %v3801_v59, 0 }
 0x5fc   :  { %v3814_v5 = vand.u32 4294901760, %v3808_v62  ;;  %v3900_v14 = vand.u32 4294901760, %v3899_v10 }
 0x5fd   :  { %v8307_v19 = vpop.eup %8306 }
 0x5fe   :  { %v3271_v20 = vsel %vm1143_vm2, %v8307_v19, 0.0  ;;  %v8309_v21 = vpop.eup %8308  ;;  %v3906_v8 = vsub.f32 %v3808_v62, %v3814_v5  ;;  %v3797_v9 = vpop.permute.xlu1 %3796 }
 0x5ff   :  { %3272 = vadd.xlane.f32.xlu0 %v3271_v20  ;;  %v3268_v22 = vsel %vm1143_vm2, %v8309_v21, 0.0  ;;  %v3804_v12 = vsel %vm632_vm1, %v3797_v9, 0 }
 0x600   :  { %v3907_v13 = vand.u32 4294901760, %v3906_v8  ;;  %v3887_v15 = vand.u32 4294901760, %v3804_v12 }
 0x602   :  { %v3908_v20 = vsub.f32 %v3906_v8, %v3907_v13 }
 0x603   :  { %3269 = vadd.xlane.f32.xlu0 %v3268_v22  ;;  %v3888_v22 = vsub.f32 %v3804_v12, %v3887_v15 }
 0x619   :  { %3282 = vrot.lane.b32.xlu0 %v8572_v48, %s8415_s30 }
 0x61d   :  { %3794 = vrot.lane.b32.xlu0 %v8574_v50, %s8417_s25 }
 0x68c   :  { %v3273_v18 = vpop.xlane.xlu0 %3272 }
 0x68d   :  { %8310 = vrcp.f32 %v3273_v18  ;;  %v3909_v18 = vand.u32 4294901760, %v3908_v20 }
 0x690   :  { %v3270_v25 = vpop.xlane.xlu0 %3269 }
 0x691   :  { %8312 = vrcp.f32 %v3270_v25 }
 0x694   :  { %v3283_v26 = vpop.permute.xlu0 %3282 }
 0x695   :  { %v3296_v28 = vand.u32 4294901760, %v3283_v26 }
 0x697   :  { %v8311_v29 = vpop.eup %8310  ;;  %v8672_v30 = vpack.c.bf16 %v3296_v28, %v3293_v24  ;;  %v3388_v31 = vsub.f32 %v3283_v26, %v3296_v28  ;;  %v3889_v24 = vand.u32 4294901760, %v3888_v22 }
 0x698   :  { %v3279_v32 = vmul.f32 %v8311_v29, %v8307_v19  ;;  %v3795_v61 = vpop.permute.xlu0 %3794  ;;  %v7896_v19 = vpack.c.bf16 %v3814_v5, %v3811_v6  ;;  %v7904_v29 = vpack.c.bf16 %v3906_v8, %v3899_v10 }
 0x699   :  { %v3389_v34 = vand.u32 4294901760, %v3388_v31  ;;  %7873 = vmatprep.subr.bf16.mxu1 %v8672_v30  ;;  %v7880_v57 = vpack.c.bf16 %v3388_v31, %v3381_v17  ;;  %v3802_v0 = vsel %vm632_vm1, %v3795_v61, 0 }
 0x69a   :  { %7875 = vmatpush3.bf16.msra.mxu1 %v8672_v30  ;;  %v3290_v35 = vsel %vm1143_vm2, %v3279_v32, 0  ;;  %v3877_v7 = vand.u32 4294901760, %v3802_v0 }
 0x69b   :  { %v8313_v36 = vpop.eup %8312  ;;  %v3390_v37 = vsub.f32 %v3388_v31, %v3389_v34  ;;  %v8677_v38 = vand.u32 4294901760, %v3290_v35  ;;  %v7888_v60 = vpack.c.bf16 %v3389_v34, %v3382_v27  ;;  %v3890_v27 = vsub.f32 %v3888_v22, %v3889_v24 }
 0x69c   :  { %v3278_v39 = vmul.f32 %v8313_v36, %v8309_v21  ;;  %v3878_v11 = vsub.f32 %v3802_v0, %v3877_v7  ;;  %v3901_v21 = vsub.f32 %v3899_v10, %v3900_v14 }
 0x69d   :  { %v3391_v41 = vand.u32 4294901760, %v3390_v37  ;;  %v3370_v42 = vsub.f32 %v3290_v35, %v8677_v38  ;;  %v3891_v28 = vand.u32 4294901760, %v3890_v27 }
 0x69e   :  { %v3287_v43 = vsel %vm1143_vm2, %v3278_v39, 0  ;;  %v3879_v16 = vand.u32 4294901760, %v3878_v11  ;;  %v3902_v17 = vand.u32 4294901760, %v3901_v21 }
 0x69f   :  { %v7876_v44 = vpack.c.bf16 %v3391_v41, %v3384_v40  ;;  %v3359_v45 = vand.u32 4294901760, %v3287_v43  ;;  %v3371_v46 = vand.u32 4294901760, %v3370_v42 }
 0x6a0   :  { %v3880_v23 = vsub.f32 %v3878_v11, %v3879_v16  ;;  %v7900_v26 = vpack.c.bf16 %v3909_v18, %v3902_v17  ;;  %v4882_v18 = vld [vmem:[%s8907_s4 + $0x8] sm:$0xff] }
 0x6a1   :  { %7877 = vmatprep.subr.bf16.mxu1 %v7876_v44  ;;  %v3360_v47 = vsub.f32 %v3287_v43, %v3359_v45  ;;  %v3372_v53 = vsub.f32 %v3370_v42, %v3371_v46 }
 0x6a2   :  { %v3881_v25 = vand.u32 4294901760, %v3880_v23  ;;  %v4881_v23 = vld [vmem:[%s8907_s4] sm:$0xff] }
 0x6a3   :  { %v3361_v49 = vand.u32 4294901760, %v3360_v47  ;;  %v3373_v56 = vand.u32 4294901760, %v3372_v53 }
 0x6a5   :  { %v3362_v54 = vsub.f32 %v3360_v47, %v3361_v49 }
 0x6a7   :  { %v3363_v55 = vand.u32 4294901760, %v3362_v54 }
 0x6a9   :  { %7336 = vmatprep.mubr.f32.mxu1 %v3363_v55 }
 0x6aa   :  { %7337 = vmatmul.mubr.f32.vlgmr.msra.gmra.mrb[4].mxu1 %v3373_v56 }
 0x6ab   :  { %7879 = vmatpush3.bf16.msra.mxu1 %v7876_v44  ;;  %7343 = vmatprep.mubr.f32.mxu1 %v3359_v45 }
 0x6ac   :  { %7881 = vmatprep.subr.bf16.mxu1 %v7880_v57 }
 0x6b2   :  { %7344 = vmatmul.mubr.f32.vlgmr.msra.gmra.mrb[4].mxu1 %v8677_v38 }
 0x6b3   :  { %7883 = vmatpush3.bf16.msra.mxu1 %v7880_v57  ;;  %7350 = vmatprep.mubr.f32.mxu1 %v3360_v47 }
 0x6b4   :  { %7885 = vmatprep.subr.bf16.mxu1 %v8672_v30 }
 0x6ba   :  { %7351 = vmatmul.mubr.f32.vlgmr.msra.gmra.mrb[4].mxu1 %v3370_v42 }
 0x6bb   :  { %7887 = vmatpush3.bf16.msra.mxu1 %v8672_v30  ;;  %7357 = vmatprep.mubr.f32.mxu1 %v3361_v49 }
 0x6bc   :  { %7889 = vmatprep.subr.bf16.mxu1 %v7888_v60 }
 0x6c2   :  { %7358 = vmatmul.mubr.f32.vlgmr.msra.gmra.mrb[4].mxu1 %v3371_v46 }
 0x6c3   :  { %7891 = vmatpush3.bf16.msra.mxu1 %v7888_v60  ;;  %7364 = vmatprep.mubr.f32.mxu1 %v3359_v45 }
 0x6c4   :  { %7893 = vmatprep.subr.bf16.mxu1 %v8672_v30 }
 0x6ca   :  { %7365 = vmatmul.mubr.f32.vlgmr.msra.gmra.mrb[4].mxu1 %v8677_v38 }
 0x6cb   :  { %7895 = vmatpush3.bf16.msra.mxu1 %v8672_v30  ;;  %7371 = vmatprep.mubr.f32.mxu1 %v3359_v45  ;;  %v7912_v30 = vpack.c.bf16 %v3907_v13, %v3900_v14 }
 0x6cc   :  { %7897 = vmatprep.subr.bf16.mxu1 %v7896_v19 }
 0x6d2   :  { %7372 = vmatmul.mubr.f32.vlgmr.msra.gmra.mrb[4].mxu1 %v8677_v38 }
 0x6d3   :  { %7378 = vmatprep.mubr.f32.mxu1 %v3881_v25  ;;  %v4902_v25 = vand.u32 4294901760, %v4882_v18 }
 0x6d4   :  { %7899 = vmatpush3.bf16.xpose.msra.mxu1 %v7896_v19 }
 0x6d5   :  { %7901 = vmatprep.subr.bf16.mxu1 %v7900_v26  ;;  %v4996_v27 = vsub.f32 %v4882_v18, %v4902_v25  ;;  %v8331_v18 = vld [vmem:[#allocation2] sm:$0xff] }
 0x6db   :  { %7379 = vmatmul.mubr.f32.vlgmr.msra.gmra.mrb[6].mxu1 %v3891_v28  ;;  %v4883_v28 = vld [vmem:[%s8907_s4 + $0x10] sm:$0xff] }
 0x6dc   :  { %7903 = vmatpush3.bf16.xpose.msra.mxu1 %v7900_v26  ;;  %7385 = vmatprep.mubr.f32.mxu1 %v3877_v7 }
 0x6dd   :  { %7905 = vmatprep.subr.bf16.mxu1 %v7904_v29 }
 0x6e3   :  { %7386 = vmatmul.mubr.f32.vlgmr.msra.gmra.mrb[6].mxu1 %v3887_v15 }
 0x6e4   :  { %7907 = vmatpush3.bf16.xpose.msra.mxu1 %v7904_v29  ;;  %7392 = vmatprep.mubr.f32.mxu1 %v3878_v11  ;;  %v4884_v29 = vld [vmem:[%s8907_s4 + $0x18] sm:$0xff]  ;;  %s8420_s4 = smov 24  }
 0x6e5   :  { %7909 = vmatprep.subr.bf16.mxu1 %v7896_v19 }
 0x6eb   :  { %7393 = vmatmul.mubr.f32.vlgmr.msra.gmra.mrb[6].mxu1 %v3888_v22 }
 0x6ec   :  { %7911 = vmatpush3.bf16.xpose.msra.mxu1 %v7896_v19  ;;  %7399 = vmatprep.mubr.f32.mxu1 %v3879_v16 }
 0x6ed   :  { %7913 = vmatprep.subr.bf16.mxu1 %v7912_v30 }
 0x6f3   :  { %7400 = vmatmul.mubr.f32.vlgmr.msra.gmra.mrb[6].mxu1 %v3889_v24  ;;  %v4899_v24 = vand.u32 4294901760, %v4881_v23 }
 0x6f4   :  { %7915 = vmatpush3.bf16.xpose.msra.mxu1 %v7912_v30  ;;  %7406 = vmatprep.mubr.f32.mxu1 %v3877_v7  ;;  %v4905_v30 = vand.u32 4294901760, %v4883_v28 }
 0x6f5   :  { %7917 = vmatprep.subr.bf16.mxu1 %v7896_v19  ;;  %v8712_v17 = vpack.c.bf16 %v4902_v25, %v4899_v24  ;;  %v4989_v26 = vsub.f32 %v4881_v23, %v4899_v24 }
 0x6fb   :  { %7407 = vmatmul.mubr.f32.vlgmr.msra.gmra.mrb[6].mxu1 %v3887_v15 }
 0x6fc   :  { %7919 = vmatpush3.bf16.xpose.msra.mxu1 %v7896_v19  ;;  %7413 = vmatprep.mubr.f32.mxu1 %v3877_v7 }
 0x703   :  { %7414 = vmatmul.mubr.f32.vlgmr.msra.gmra.mrb[6].mxu1 %v3887_v15 }
 0x7a5   :  { %v7373_v31 = vpop.f32.mrb[4].mxu1 }
 0x7a6   :  { %v3784_v32 = vpop.f32.mrb[5].mxu1 }
 0x7d6   :  { %v7415_v33 = vpop.f32.mrb[6].mxu1 }
 0x7d7   :  { %v8144_v34 = vadd.f32 %v7415_v33, %v8604_v51  ;;  %v4302_v35 = vpop.f32.mrb[7].mxu1  ;;  %v4997_v33 = vand.u32 4294901760, %v4996_v27 }
 0x7d8   :  { %v8145_v36 = vadd.f32 %v4302_v35, %v8606_v52 }
 0x7d9   :  { %v4315_v37 = vsel %vm1143_vm2, %v8144_v34, -inf }
 0x7da   :  { %4316 = vmax.xlane.f32.xlu1 %v4315_v37  ;;  %v4312_v38 = vsel %vm1143_vm2, %v8145_v36, -inf  ;;  %v5003_v37 = vsub.f32 %v4883_v28, %v4905_v30 }
 0x7db   :  { %4313 = vmax.xlane.f32.xlu0 %v4312_v38 }
 0x7eb   :  { %4336 = vrot.lane.b32.xlu1 %v8574_v50, %s8418_s26 }
 0x7ef   :  { %4852 = vrot.lane.b32.xlu1 %v8658_v4, %s8406_s24 }
 0x7f3   :  { %4854 = vrot.lane.b32.xlu1 %v8656_v3, %s8406_s24 }
 0x7f7   :  { %4862 = vrot.lane.b32.xlu1 %v7373_v31, %s8419_s27  ;;  %v4908_v31 = vand.u32 4294901760, %v4884_v29 }
 0x7f9   :  { %v5010_v38 = vsub.f32 %v4884_v29, %v4908_v31 }
 0x867   :  { %v4317_v51 = vpop.xlane.xlu1 %4316 }
 0x868   :  { %v4319_v39 = vsub.f32 %v8144_v34, %v4317_v51  ;;  %v4314_v52 = vpop.xlane.xlu0 %4313  ;;  %v8722_v34 = vpack.c.bf16 %v4908_v31, %v4905_v30 }
 0x869   :  { %v4318_v40 = vsub.f32 %v8145_v36, %v4314_v52  ;;  %v4998_v36 = vsub.f32 %v4996_v27, %v4997_v33  ;;  %v5004_v52 = vand.u32 4294901760, %v5003_v37 }
 0x86a   :  { %v4322_v41 = vmul.f32 1.442695, %v4319_v39 }
 0x86b   :  { %v4320_v42 = vmul.f32 1.442695, %v4318_v40  ;;  %v4337_v3 = vpop.permute.xlu1 %4336  ;;  %v4999_v39 = vand.u32 4294901760, %v4998_v36  ;;  %v5473_v36 = vld [vmem:[%s8911_s8] sm:$0xff] }
 0x86c   :  { %8314 = vpow2.f32 %v4322_v41  ;;  %v4349_v46 = vand.u32 4294901760, %v4337_v3  ;;  %v5011_v41 = vand.u32 4294901760, %v5010_v38 }
 0x86d   :  { %8316 = vpow2.f32 %v4320_v42 }
 0x86e   :  { %v4437_v49 = vsub.f32 %v4337_v3, %v4349_v46 }
 0x870   :  { %v4438_v54 = vand.u32 4294901760, %v4437_v49 }
 0x872   :  { %v4439_v60 = vsub.f32 %v4437_v49, %v4438_v54 }
 0x874   :  { %v4440_v6 = vand.u32 4294901760, %v4439_v60 }
 0x876   :  { %v8315_v43 = vpop.eup %8314 }
 0x877   :  { %v4327_v44 = vsel %vm1143_vm2, %v8315_v43, 0.0  ;;  %v8317_v50 = vpop.eup %8316 }
 0x878   :  { %4328 = vadd.xlane.f32.xlu0 %v4327_v44  ;;  %v4324_v4 = vsel %vm1143_vm2, %v8317_v50, 0.0  ;;  %v5005_v44 = vsub.f32 %v5003_v37, %v5004_v52 }
 0x87c   :  { %4325 = vadd.xlane.f32.xlu0 %v4324_v4  ;;  %v5006_v4 = vand.u32 4294901760, %v5005_v44 }
 0x892   :  { %4338 = vrot.lane.b32.xlu0 %v8572_v48, %s8418_s26 }
 0x896   :  { %4860 = vrot.lane.b32.xlu0 %v3784_v32, %s8419_s27  ;;  %v4990_v32 = vand.u32 4294901760, %v4989_v26 }
 0x898   :  { %v4991_v35 = vsub.f32 %v4989_v26, %v4990_v32 }
 0x89a   :  { %v4992_v51 = vand.u32 4294901760, %v4991_v35 }
 0x905   :  { %v4329_v45 = vpop.xlane.xlu0 %4328 }
 0x906   :  { %8318 = vrcp.f32 %v4329_v45 }
 0x909   :  { %v4326_v47 = vpop.xlane.xlu0 %4325 }
 0x90a   :  { %8320 = vrcp.f32 %v4326_v47  ;;  %v7964_v47 = vpack.c.bf16 %v5010_v38, %v5003_v37  ;;  %v5474_v37 = vld [vmem:[%s8911_s8 + $0x8] sm:$0xff] }
 0x90d   :  { %v4339_v53 = vpop.permute.xlu0 %4338 }
 0x90e   :  { %v4352_v55 = vand.u32 4294901760, %v4339_v53 }
 0x910   :  { %v8319_v56 = vpop.eup %8318  ;;  %v7920_v57 = vpack.c.bf16 %v4352_v55, %v4349_v46  ;;  %v4444_v58 = vsub.f32 %v4339_v53, %v4352_v55  ;;  %v7960_v46 = vpack.c.bf16 %v4996_v27, %v4989_v26  ;;  %v7980_v53 = vpack.c.bf16 %v5011_v41, %v5004_v52  ;;  %v5476_v52 = vld [vmem:[%s8911_s8 + $0x18] sm:$0xff] }
 0x911   :  { %v4335_v59 = vmul.f32 %v8319_v56, %v8315_v43  ;;  %v7952_v43 = vpack.c.bf16 %v4999_v39, %v4992_v51  ;;  %v5491_v51 = vand.u32 4294901760, %v5473_v36  ;;  %v5494_v39 = vand.u32 4294901760, %v5474_v37 }
 0x912   :  { %v4445_v61 = vand.u32 4294901760, %v4444_v58  ;;  %7921 = vmatprep.subr.bf16.mxu0 %v7920_v57  ;;  %v7928_v21 = vpack.c.bf16 %v4444_v58, %v4437_v49  ;;  %v7976_v49 = vpack.c.bf16 %v4997_v33, %v4990_v32 }
 0x913   :  { %7923 = vmatpush3.bf16.msra.mxu0 %v7920_v57  ;;  %v4346_v48 = vsel %vm1143_vm2, %v4335_v59, 0  ;;  %v5581_v44 = vsub.f32 %v5473_v36, %v5491_v51 }
 0x914   :  { %v8321_v62 = vpop.eup %8320  ;;  %v4446_v63 = vsub.f32 %v4444_v58, %v4445_v61  ;;  %v4425_v0 = vand.u32 4294901760, %v4346_v48  ;;  %v7936_v22 = vpack.c.bf16 %v4445_v61, %v4438_v54  ;;  %v4853_v54 = vpop.permute.xlu1 %4852 }
 0x915   :  { %v4334_v5 = vmul.f32 %v8321_v62, %v8317_v50  ;;  %v5012_v50 = vsub.f32 %v5010_v38, %v5011_v41  ;;  %v4874_v59 = vsel %vm632_vm1, %v8654_v2, %v4853_v54  ;;  %v5475_v38 = vld [vmem:[%s8911_s8 + $0x10] sm:$0xff]  ;;  %v5500_v41 = vand.u32 4294901760, %v5476_v52 }
 0x916   :  { %v4447_v7 = vand.u32 4294901760, %v4446_v63  ;;  %v4426_v8 = vsub.f32 %v4346_v48, %v4425_v0 }
 0x917   :  { %v4343_v9 = vsel %vm1143_vm2, %v4334_v5, 0  ;;  %v5013_v3 = vand.u32 4294901760, %v5012_v50  ;;  %v5588_v50 = vsub.f32 %v5474_v37, %v5494_v39  ;;  %v6022_v37 = vld [vmem:[%s8913_s10 + $0x10] sm:$0xff] }
 0x918   :  { %v7924_v10 = vpack.c.bf16 %v4447_v7, %v4440_v6  ;;  %v4415_v11 = vand.u32 4294901760, %v4343_v9  ;;  %v4427_v12 = vand.u32 4294901760, %v4426_v8  ;;  %v4855_v55 = vpop.permute.xlu1 %4854 }
 0x919   :  { %v7956_v45 = vpack.c.bf16 %v5013_v3, %v5006_v4  ;;  %v4875_v58 = vsel %vm632_vm1, %v8652_v1, %v4855_v55  ;;  %v5582_v4 = vand.u32 4294901760, %v5581_v44  ;;  %v5589_v3 = vand.u32 4294901760, %v5588_v50 }
 0x91a   :  { %7925 = vmatprep.subr.bf16.mxu0 %v7924_v10  ;;  %v4416_v13 = vsub.f32 %v4343_v9, %v4415_v11  ;;  %v4428_v15 = vsub.f32 %v4426_v8, %v4427_v12 }
 0x91c   :  { %v4417_v14 = vand.u32 4294901760, %v4416_v13  ;;  %v4429_v20 = vand.u32 4294901760, %v4428_v15  ;;  %v4863_v56 = vpop.permute.xlu1 %4862  ;;  %v6689_v15 = vld [vmem:[%s8908_s5] ss:$0 sm:$0xff] }
 0x91d   :  { %v4877_v60 = vsel %vm1143_vm2, %v4875_v58, %v4863_v56 }
 0x91e   :  { %v4418_v16 = vsub.f32 %v4416_v13, %v4417_v14 }
 0x920   :  { %v4419_v19 = vand.u32 4294901760, %v4418_v16 }
 0x922   :  { %7420 = vmatprep.mubr.f32.mxu0 %v4419_v19 }
 0x923   :  { %7421 = vmatmul.mubr.f32.vlgmr.msra.gmra.mrb[8].mxu0 %v4429_v20 }
 0x924   :  { %7927 = vmatpush3.bf16.msra.mxu0 %v7924_v10  ;;  %7427 = vmatprep.mubr.f32.mxu0 %v4415_v11 }
 0x925   :  { %7929 = vmatprep.subr.bf16.mxu0 %v7928_v21 }
 0x92b   :  { %7428 = vmatmul.mubr.f32.vlgmr.msra.gmra.mrb[8].mxu0 %v4425_v0 }
 0x92c   :  { %7931 = vmatpush3.bf16.msra.mxu0 %v7928_v21  ;;  %7434 = vmatprep.mubr.f32.mxu0 %v4416_v13 }
 0x92d   :  { %7933 = vmatprep.subr.bf16.mxu0 %v7920_v57 }
 0x933   :  { %7435 = vmatmul.mubr.f32.vlgmr.msra.gmra.mrb[8].mxu0 %v4426_v8 }
 0x934   :  { %7935 = vmatpush3.bf16.msra.mxu0 %v7920_v57  ;;  %7441 = vmatprep.mubr.f32.mxu0 %v4417_v14 }
 0x935   :  { %7937 = vmatprep.subr.bf16.mxu0 %v7936_v22 }
 0x93b   :  { %7442 = vmatmul.mubr.f32.vlgmr.msra.gmra.mrb[8].mxu0 %v4427_v12 }
 0x93c   :  { %7939 = vmatpush3.bf16.msra.mxu0 %v7936_v22  ;;  %7448 = vmatprep.mubr.f32.mxu0 %v4415_v11  ;;  %v8330_v22 = vld [vmem:[#allocation2 + $0x8] sm:$0xff] }
 0x93d   :  { %7941 = vmatprep.subr.bf16.mxu0 %v7920_v57 }
 0x943   :  { %7449 = vmatmul.mubr.f32.vlgmr.msra.gmra.mrb[8].mxu0 %v4425_v0 }
 0x944   :  { %7943 = vmatpush3.bf16.msra.mxu0 %v7920_v57  ;;  %7455 = vmatprep.mubr.f32.mxu0 %v4415_v11  ;;  %v4861_v57 = vpop.permute.xlu0 %4860 }
 0x945   :  { %7945 = vmatprep.subr.bf16.mxu0 %v8712_v17  ;;  %v4876_v48 = vsel %vm1143_vm2, %v4874_v59, %v4861_v57 }
 0x94b   :  { %7456 = vmatmul.mubr.f32.vlgmr.msra.gmra.mrb[8].mxu0 %v4425_v0 }
 0x94c   :  { %7947 = vmatpush3.bf16.msra.mxu0 %v8712_v17 }
 0x94d   :  { %7949 = vmatprep.subr.bf16.mxu0 %v8722_v34 }
 0x950   :  { %7951 = vmatpush3.bf16.msra.mxu0 %v8722_v34 }
 0x951   :  { %7953 = vmatprep.subr.bf16.mxu0 %v7952_v43 }
 0xa1e   :  { %v7457_v40 = vpop.f32.mrb[8].mxu0 }
 0xa1f   :  { %4870 = vrot.lane.b32.xlu1 %v7457_v40, %s8420_s4  ;;  %v4840_v42 = vpop.f32.mrb[9].mxu0  ;;  %v5497_v40 = vand.u32 4294901760, %v5475_v38 }
 0xa20   :  { %4868 = vrot.lane.b32.xlu0 %v4840_v42, %s8420_s4  ;;  %v8765_v42 = vpack.c.bf16 %v5494_v39, %v5491_v51  ;;  %v6049_v51 = vand.u32 4294901760, %v6022_v37 }
 0xa22   :  { %7993 = vmatprep.subr.bf16.mxu1 %v8765_v42 }
 0xa23   :  { %7995 = vmatpush3.bf16.msra.mxu1 %v8765_v42 }
 0xa91   :  { %v4871_v61 = vpop.permute.xlu1 %4870 }
 0xa92   :  { %v4880_v62 = vsel %vm4878_vm3, %v4877_v60, %v4871_v61  ;;  %v4869_v63 = vpop.permute.xlu0 %4868 }
 0xa93   :  { %v4896_v0 = vsel %vm91_vm0, %v4880_v62, 0  ;;  %v4879_v5 = vsel %vm4878_vm3, %v4876_v48, %v4869_v63  ;;  %v8008_v62 = vpack.c.bf16 %v5588_v50, %v5581_v44 }
 0xa94   :  { %v4977_v6 = vand.u32 4294901760, %v4896_v0  ;;  %v4893_v7 = vsel %vm91_vm0, %v4879_v5, 0 }
 0xa95   :  { %v4967_v8 = vand.u32 4294901760, %v4893_v7 }
 0xa96   :  { %v4978_v9 = vsub.f32 %v4896_v0, %v4977_v6  ;;  %v8024_v0 = vpack.c.bf16 %v5589_v3, %v5582_v4 }
 0xa97   :  { %v4968_v10 = vsub.f32 %v4893_v7, %v4967_v8  ;;  %v8781_v7 = vld [vmem:[%s8913_s10 + $0x8] sm:$0xff] }
 0xa98   :  { %v4979_v1 = vand.u32 4294901760, %v4978_v9 }
 0xa99   :  { %v4969_v11 = vand.u32 4294901760, %v4968_v10 }
 0xa9a   :  { %v4980_v12 = vsub.f32 %v4978_v9, %v4979_v1 }
 0xa9b   :  { %v4970_v2 = vsub.f32 %v4968_v10, %v4969_v11 }
 0xa9c   :  { %v4981_v14 = vand.u32 4294901760, %v4980_v12 }
 0xa9d   :  { %v4971_v13 = vand.u32 4294901760, %v4970_v2 }
 0xa9f   :  { %7466 = vmatprep.mubr.f32.mxu0 %v4971_v13 }
 0xaa0   :  { %7467 = vmatmul.mubr.f32.vlgmr.msra.gmra.mrb[10].mxu0 %v4981_v14 }
 0xaa1   :  { %7955 = vmatpush3.bf16.msra.mxu0 %v7952_v43  ;;  %7477 = vmatprep.mubr.f32.mxu0 %v4967_v8  ;;  %v8767_v43 = vpack.c.bf16 %v5500_v41, %v5497_v40 }
 0xaa2   :  { %7957 = vmatprep.subr.bf16.mxu0 %v7956_v45 }
 0xaa3   :  { %7997 = vmatprep.subr.bf16.mxu1 %v8767_v43 }
 0xaa4   :  { %7999 = vmatpush3.bf16.msra.mxu1 %v8767_v43 }
 0xaa5   :  { %7959 = vmatpush3.bf16.msra.mxu0 %v7956_v45  ;;  %v5583_v45 = vsub.f32 %v5581_v44, %v5582_v4  ;;  %v6027_v4 = vld [vmem:[%s8913_s10 + $0x38] sm:$0xff] }
 0xaa6   :  { %7961 = vmatprep.subr.bf16.mxu0 %v7960_v46 }
 0xaa8   :  { %7478 = vmatmul.mubr.f32.vlgmr.msra.gmra.mrb[10].mxu0 %v4977_v6 }
 0xaa9   :  { %7963 = vmatpush3.bf16.msra.mxu0 %v7960_v46  ;;  %7488 = vmatprep.mubr.f32.mxu0 %v4968_v10  ;;  %v5590_v46 = vsub.f32 %v5588_v50, %v5589_v3  ;;  %v6026_v50 = vld [vmem:[%s8913_s10 + $0x30] sm:$0xff] }
 0xaaa   :  { %7965 = vmatprep.subr.bf16.mxu0 %v7964_v47  ;;  %v6061_v3 = vand.u32 4294901760, %v6026_v50 }
 0xaab   :  { %v5591_v54 = vand.u32 4294901760, %v5590_v46 }
 0xaad   :  { %7967 = vmatpush3.bf16.msra.mxu0 %v7964_v47  ;;  %v5595_v47 = vsub.f32 %v5475_v38, %v5497_v40  ;;  %v6023_v38 = vld [vmem:[%s8913_s10 + $0x18] sm:$0xff]  ;;  %v6024_v40 = vld [vmem:[%s8913_s10 + $0x20] sm:$0xff] }
 0xaae   :  { %7969 = vmatprep.subr.bf16.mxu0 %v8712_v17  ;;  %v6052_v39 = vand.u32 4294901760, %v6023_v38 }
 0xaaf   :  { %v5596_v55 = vand.u32 4294901760, %v5595_v47 }
 0xab0   :  { %7489 = vmatmul.mubr.f32.vlgmr.msra.gmra.mrb[10].mxu0 %v4978_v9  ;;  %v6046_v9 = vand.u32 4294901760, %v8781_v7 }
 0xab1   :  { %7971 = vmatpush3.bf16.msra.mxu0 %v8712_v17  ;;  %7499 = vmatprep.mubr.f32.mxu0 %v4969_v11  ;;  %v5597_v58 = vsub.f32 %v5595_v47, %v5596_v55 }
 0xab2   :  { %7973 = vmatprep.subr.bf16.mxu0 %v8722_v34 }
 0xab3   :  { %v5598_v60 = vand.u32 4294901760, %v5597_v58  ;;  %v6151_v58 = vsub.f32 %v6022_v37, %v6049_v51 }
 0xab5   :  { %7975 = vmatpush3.bf16.msra.mxu0 %v8722_v34 }
 0xab6   :  { %7977 = vmatprep.subr.bf16.mxu0 %v7976_v49 }
 0xab8   :  { %7500 = vmatmul.mubr.f32.vlgmr.msra.gmra.mrb[10].mxu0 %v4979_v1 }
 0xab9   :  { %7979 = vmatpush3.bf16.msra.mxu0 %v7976_v49  ;;  %7510 = vmatprep.mubr.f32.mxu0 %v4967_v8  ;;  %v5602_v49 = vsub.f32 %v5476_v52, %v5500_v41  ;;  %v8824_v52 = vpack.c.bf16 %v6052_v39, %v6049_v51  ;;  %v6025_v41 = vld [vmem:[%s8913_s10 + $0x28] sm:$0xff] }
 0xaba   :  { %7981 = vmatprep.subr.bf16.mxu0 %v7980_v53 }
 0xabb   :  { %v5603_v56 = vand.u32 4294901760, %v5602_v49  ;;  %v8012_v63 = vpack.c.bf16 %v5602_v49, %v5595_v47 }
 0xabd   :  { %7983 = vmatpush3.bf16.msra.mxu0 %v7980_v53  ;;  %v5584_v53 = vand.u32 4294901760, %v5583_v45  ;;  %v5604_v59 = vsub.f32 %v5602_v49, %v5603_v56  ;;  %v8028_v5 = vpack.c.bf16 %v5603_v56, %v5596_v55  ;;  %v6064_v45 = vand.u32 4294901760, %v6027_v4 }
 0xabe   :  { %7985 = vmatprep.subr.bf16.mxu0 %v8712_v17  ;;  %v6144_v49 = vsub.f32 %v8781_v7, %v6046_v9 }
 0xabf   :  { %v8000_v57 = vpack.c.bf16 %v5591_v54, %v5584_v53  ;;  %v5605_v61 = vand.u32 4294901760, %v5604_v59  ;;  %v8848_v46 = vpack.c.bf16 %v6064_v45, %v6061_v3  ;;  %v6158_v59 = vsub.f32 %v6023_v38, %v6052_v39 }
 0xac0   :  { %7511 = vmatmul.mubr.f32.vlgmr.msra.gmra.mrb[10].mxu0 %v4977_v6  ;;  %v6145_v54 = vand.u32 4294901760, %v6144_v49 }
 0xac1   :  { %7987 = vmatpush3.bf16.msra.mxu0 %v8712_v17  ;;  %7521 = vmatprep.mubr.f32.mxu0 %v4967_v8  ;;  %v8004_v48 = vpack.c.bf16 %v5605_v61, %v5598_v60 }
 0xac2   :  { %7989 = vmatprep.subr.bf16.mxu0 %v8722_v34  ;;  %8001 = vmatprep.subr.bf16.mxu1 %v8000_v57 }
 0xac5   :  { %7991 = vmatpush3.bf16.msra.mxu0 %v8722_v34 }
 0xac8   :  { %7522 = vmatmul.mubr.f32.vlgmr.msra.gmra.mrb[10].mxu0 %v4977_v6  ;;  %v8776_v6 = vld [vmem:[%s8913_s10] sm:$0xff] }
 0xac9   :  { %v6043_v8 = vand.u32 4294901760, %v8776_v6 }
 0xacb   :  { %v8789_v10 = vpack.c.bf16 %v6046_v9, %v6043_v8  ;;  %v6137_v47 = vsub.f32 %v8776_v6, %v6043_v8 }
 0xacd   :  { %8089 = vmatprep.subr.bf16.mxu0 %v8789_v10  ;;  %v6138_v53 = vand.u32 4294901760, %v6137_v47 }
 0xace   :  { %8091 = vmatpush3.bf16.msra.mxu0 %v8789_v10 }
 0xacf   :  { %8093 = vmatprep.subr.bf16.mxu0 %v8824_v52  ;;  %v8104_v55 = vpack.c.bf16 %v6145_v54, %v6138_v53  ;;  %v6139_v56 = vsub.f32 %v6137_v47, %v6138_v53 }
 0xad1   :  { %v6140_v60 = vand.u32 4294901760, %v6139_v56 }
 0xad2   :  { %8095 = vmatpush3.bf16.msra.mxu0 %v8824_v52 }
 0xb9b   :  { %v7523_v16 = vpop.f32.mrb[10].mxu0 }
 0xb9c   :  { %v8146_v19 = vadd.f32 %v7523_v16, %v6689_v15  ;;  %v5416_v20 = vpop.f32.mrb[11].mxu0  ;;  %v6690_v16 = vld [vmem:[%s8909_s6] ss:$0 sm:$0xff] }
 0xb9d   :  { %v8147_v21 = vadd.f32 %v6689_v15, %v5416_v20  ;;  %v6691_v20 = vld [vmem:[%s8910_s7] ss:$0 sm:$0xff] }
 0xb9e   :  { %v5427_v23 = vadd.f32 %v8330_v22, %v8146_v19 }
 0xb9f   :  { %v5426_v24 = vadd.f32 %v8331_v18, %v8147_v21 }
 0xba0   :  { %v5431_v25 = vsel %vm91_vm0, %v5427_v23, 0.0 }
 0xba1   :  { %5432 = vadd.xlane.f32.xlu1 %v5431_v25  ;;  %v5428_v17 = vsel %vm91_vm0, %v5426_v24, 0.0 }
 0xba2   :  { %5429 = vadd.xlane.f32.xlu0 %v5428_v17 }
 0xc2e   :  { %v5433_v26 = vpop.xlane.xlu1 %5432 }
 0xc2f   :  { %v5436_v27 = vmul.f32 0.03125, %v5433_v26  ;;  %v5430_v28 = vpop.xlane.xlu0 %5429 }
 0xc30   :  { %v5435_v29 = vmul.f32 0.03125, %v5430_v28 }
 0xc31   :  { %v8747_v30 = vsub.f32 %v5427_v23, %v5436_v27 }
 0xc32   :  { %v5437_v31 = vsub.f32 %v5426_v24, %v5435_v29 }
 0xc33   :  { %v5440_v34 = vmul.f32 %v8747_v30, %v8747_v30 }
 0xc34   :  { %v5439_v32 = vmul.f32 %v5437_v31, %v5437_v31 }
 0xc35   :  { %v5444_v35 = vsel %vm91_vm0, %v5440_v34, 0.0 }
 0xc36   :  { %v5441_v33 = vsel %vm91_vm0, %v5439_v32, 0.0 }
 0xc37   :  { %5442 = vadd.xlane.f32.xlu0 %v5441_v33 }
 0xc3b   :  { %5445 = vadd.xlane.f32.xlu0 %v5444_v35 }
 0xcc4   :  { %v5443_v1 = vpop.xlane.xlu0 %5442 }
 0xcc5   :  { %v5447_v11 = vmul.f32 0.03125, %v5443_v1 }
 0xcc7   :  { %v5449_v12 = vadd.f32 1e-05, %v5447_v11 }
 0xcc8   :  { %v5446_v2 = vpop.xlane.xlu0 %5445 }
 0xcc9   :  { %8322 = vrsqrt.f32 %v5449_v12  ;;  %v5448_v13 = vmul.f32 0.03125, %v5446_v2 }
 0xccb   :  { %v5450_v14 = vadd.f32 1e-05, %v5448_v13 }
 0xccd   :  { %8324 = vrsqrt.f32 %v5450_v14 }
 0xcd3   :  { %v8323_v15 = vpop.eup %8322 }
 0xcd4   :  { %v5453_v19 = vmul.f32 %v8323_v15, %v5437_v31  ;;  %v6179_v15 = vsub.f32 %v6026_v50, %v6061_v3 }
 0xcd6   :  { %v5462_v21 = vmul.f32 %v6690_v16, %v5453_v19  ;;  %v6186_v19 = vsub.f32 %v6027_v4, %v6064_v45 }
 0xcd7   :  { %v8325_v22 = vpop.eup %8324 }
 0xcd8   :  { %v5454_v23 = vmul.f32 %v8325_v22, %v8747_v30  ;;  %v8800_v18 = vadd.f32 %v6691_v20, %v5462_v21  ;;  %v6180_v22 = vand.u32 4294901760, %v6179_v15 }
 0xcda   :  { %v5463_v24 = vmul.f32 %v6690_v16, %v5454_v23  ;;  %v5485_v25 = vsel %vm91_vm0, %v8800_v18, 0  ;;  %v6187_v23 = vand.u32 4294901760, %v6186_v19 }
 0xcdb   :  { %v5559_v17 = vand.u32 4294901760, %v5485_v25 }
 0xcdc   :  { %v8804_v26 = vadd.f32 %v6691_v20, %v5463_v24 }
 0xcdd   :  { %v5560_v27 = vsub.f32 %v5485_v25, %v5559_v17  ;;  %v6181_v25 = vsub.f32 %v6179_v15, %v6180_v22 }
 0xcde   :  { %v5488_v28 = vsel %vm91_vm0, %v8804_v26, 0 }
 0xcdf   :  { %v5561_v29 = vand.u32 4294901760, %v5560_v27  ;;  %v5569_v31 = vand.u32 4294901760, %v5488_v28 }
 0xce1   :  { %v5562_v32 = vsub.f32 %v5560_v27, %v5561_v29  ;;  %v5570_v33 = vsub.f32 %v5488_v28, %v5569_v31  ;;  %v6182_v28 = vand.u32 4294901760, %v6181_v25 }
 0xce3   :  { %v5563_v34 = vand.u32 4294901760, %v5562_v32  ;;  %v5571_v35 = vand.u32 4294901760, %v5570_v33  ;;  %v8072_v32 = vpack.c.bf16 %v6144_v49, %v6137_v47 }
 0xce5   :  { %7532 = vmatprep.mubr.f32.mxu1 %v5563_v34  ;;  %v5572_v30 = vsub.f32 %v5570_v33, %v5571_v35 }
 0xce7   :  { %v5573_v36 = vand.u32 4294901760, %v5572_v30  ;;  %v6692_v30 = vld [vmem:[%s8912_s9] ss:$0 sm:$0xff] }
 0xce9   :  { %7533 = vmatmul.mubr.f32.vlgmr.msra.gmra.mrb[8].mxu1 %v5573_v36 }
 0xcea   :  { %8003 = vmatpush3.bf16.msra.mxu1 %v8000_v57  ;;  %7543 = vmatprep.mubr.f32.mxu1 %v5559_v17  ;;  %v6146_v57 = vsub.f32 %v6144_v49, %v6145_v54 }
 0xceb   :  { %8005 = vmatprep.subr.bf16.mxu1 %v8004_v48 }
 0xcec   :  { %v6147_v61 = vand.u32 4294901760, %v6146_v57 }
 0xcee   :  { %8007 = vmatpush3.bf16.msra.mxu1 %v8004_v48  ;;  %v6152_v48 = vand.u32 4294901760, %v6151_v58 }
 0xcef   :  { %8009 = vmatprep.subr.bf16.mxu1 %v8008_v62 }
 0xcf1   :  { %7544 = vmatmul.mubr.f32.vlgmr.msra.gmra.mrb[8].mxu1 %v5569_v31 }
 0xcf2   :  { %8011 = vmatpush3.bf16.msra.mxu1 %v8008_v62  ;;  %7554 = vmatprep.mubr.f32.mxu1 %v5560_v27  ;;  %v6159_v62 = vand.u32 4294901760, %v6158_v59  ;;  %v6188_v27 = vsub.f32 %v6186_v19, %v6187_v23 }
 0xcf3   :  { %8013 = vmatprep.subr.bf16.mxu1 %v8012_v63 }
 0xcf4   :  { %v8108_v7 = vpack.c.bf16 %v6159_v62, %v6152_v48  ;;  %v6160_v8 = vsub.f32 %v6158_v59, %v6159_v62 }
 0xcf6   :  { %8015 = vmatpush3.bf16.msra.mxu1 %v8012_v63  ;;  %v8056_v63 = vpack.c.bf16 %v6147_v61, %v6140_v60  ;;  %v6161_v12 = vand.u32 4294901760, %v6160_v8 }
 0xcf7   :  { %8017 = vmatprep.subr.bf16.mxu1 %v8765_v42 }
 0xcf9   :  { %7555 = vmatmul.mubr.f32.vlgmr.msra.gmra.mrb[8].mxu1 %v5570_v33  ;;  %v8076_v33 = vpack.c.bf16 %v6158_v59, %v6151_v58 }
 0xcfa   :  { %8019 = vmatpush3.bf16.msra.mxu1 %v8765_v42  ;;  %7565 = vmatprep.mubr.f32.mxu1 %v5561_v29  ;;  %v6189_v29 = vand.u32 4294901760, %v6188_v27 }
 0xcfb   :  { %8021 = vmatprep.subr.bf16.mxu1 %v8767_v43 }
 0xcfe   :  { %8023 = vmatpush3.bf16.msra.mxu1 %v8767_v43 }
 0xcff   :  { %8025 = vmatprep.subr.bf16.mxu1 %v8024_v0 }
 0xd01   :  { %7566 = vmatmul.mubr.f32.vlgmr.msra.gmra.mrb[8].mxu1 %v5571_v35  ;;  %v8084_v35 = vpack.c.bf16 %v6186_v19, %v6179_v15 }
 0xd02   :  { %8027 = vmatpush3.bf16.msra.mxu1 %v8024_v0  ;;  %7576 = vmatprep.mubr.f32.mxu1 %v5559_v17  ;;  %v6153_v0 = vsub.f32 %v6151_v58, %v6152_v48 }
 0xd03   :  { %8029 = vmatprep.subr.bf16.mxu1 %v8028_v5 }
 0xd04   :  { %v6154_v9 = vand.u32 4294901760, %v6153_v0 }
 0xd06   :  { %8031 = vmatpush3.bf16.msra.mxu1 %v8028_v5  ;;  %v8060_v16 = vpack.c.bf16 %v6161_v12, %v6154_v9 }
 0xd07   :  { %8033 = vmatprep.subr.bf16.mxu1 %v8765_v42 }
 0xd09   :  { %7577 = vmatmul.mubr.f32.vlgmr.msra.gmra.mrb[8].mxu1 %v5569_v31 }
 0xd0a   :  { %8035 = vmatpush3.bf16.msra.mxu1 %v8765_v42  ;;  %7587 = vmatprep.mubr.f32.mxu1 %v5559_v17  ;;  %v6055_v42 = vand.u32 4294901760, %v6024_v40  ;;  %v8116_v17 = vpack.c.bf16 %v6187_v23, %v6180_v22 }
 0xd0b   :  { %8037 = vmatprep.subr.bf16.mxu1 %v8767_v43 }
 0xd0c   :  { %v6165_v5 = vsub.f32 %v6024_v40, %v6055_v42 }
 0xd0e   :  { %8039 = vmatpush3.bf16.msra.mxu1 %v8767_v43  ;;  %v6058_v43 = vand.u32 4294901760, %v6025_v41  ;;  %v6166_v1 = vand.u32 4294901760, %v6165_v5 }
 0xd0f   :  { %8041 = vmatprep.subr.bf16.mxu1 %v8789_v10 }
 0xd10   :  { %v8836_v44 = vpack.c.bf16 %v6058_v43, %v6055_v42  ;;  %v6172_v6 = vsub.f32 %v6025_v41, %v6058_v43  ;;  %v6167_v13 = vsub.f32 %v6165_v5, %v6166_v1 }
 0xd11   :  { %7588 = vmatmul.mubr.f32.vlgmr.msra.gmra.mrb[8].mxu1 %v5569_v31  ;;  %v8068_v31 = vpack.c.bf16 %v6189_v29, %v6182_v28 }
 0xd12   :  { %8043 = vmatpush3.bf16.msra.mxu1 %v8789_v10  ;;  %8097 = vmatprep.subr.bf16.mxu0 %v8836_v44  ;;  %v6173_v11 = vand.u32 4294901760, %v6172_v6  ;;  %v6168_v20 = vand.u32 4294901760, %v6167_v13  ;;  %v8080_v34 = vpack.c.bf16 %v6172_v6, %v6165_v5 }
 0xd13   :  { %8045 = vmatprep.subr.bf16.mxu1 %v8824_v52  ;;  %8099 = vmatpush3.bf16.msra.mxu0 %v8836_v44 }
 0xd14   :  { %8101 = vmatprep.subr.bf16.mxu0 %v8848_v46  ;;  %v8112_v2 = vpack.c.bf16 %v6173_v11, %v6166_v1  ;;  %v6174_v14 = vsub.f32 %v6172_v6, %v6173_v11 }
 0xd16   :  { %8047 = vmatpush3.bf16.msra.mxu1 %v8824_v52  ;;  %v6175_v21 = vand.u32 4294901760, %v6174_v14 }
 0xd17   :  { %8049 = vmatprep.subr.bf16.mxu1 %v8836_v44  ;;  %8103 = vmatpush3.bf16.msra.mxu0 %v8848_v46 }
 0xd18   :  { %8105 = vmatprep.subr.bf16.mxu0 %v8104_v55  ;;  %v8064_v24 = vpack.c.bf16 %v6175_v21, %v6168_v20  ;;  %v6694_v20 = vld [vmem:[%s8915_s12] ss:$0 sm:$0xff] }
 0xd1a   :  { %8051 = vmatpush3.bf16.msra.mxu1 %v8836_v44 }
 0xd1b   :  { %8053 = vmatprep.subr.bf16.mxu1 %v8848_v46 }
 0xd1e   :  { %8055 = vmatpush3.bf16.msra.mxu1 %v8848_v46 }
 0xd1f   :  { %8057 = vmatprep.subr.bf16.mxu1 %v8056_v63 }
 0xde4   :  { %v7589_v36 = vpop.f32.mrb[8].mxu1 }
 0xde5   :  { %v8148_v37 = vadd.f32 %v7589_v36, %v6692_v30  ;;  %v6008_v38 = vpop.f32.mrb[9].mxu1 }
 0xde6   :  { %v8149_v51 = vadd.f32 %v6692_v30, %v6008_v38 }
 0xde7   :  { %v6019_v39 = vmax.f32 %v8148_v37, 0.0 }
 0xde8   :  { %v6018_v40 = vmax.f32 %v8149_v51, 0.0 }
 0xde9   :  { %v6040_v41 = vsel %vm6035_vm4, %v6019_v39, 0 }
 0xdea   :  { %v6125_v42 = vand.u32 4294901760, %v6040_v41  ;;  %v6037_v43 = vsel %vm6035_vm4, %v6018_v40, 0 }
 0xdeb   :  { %v6115_v50 = vand.u32 4294901760, %v6037_v43 }
 0xdec   :  { %v6126_v4 = vsub.f32 %v6040_v41, %v6125_v42 }
 0xded   :  { %v6116_v3 = vsub.f32 %v6037_v43, %v6115_v50 }
 0xdee   :  { %v6127_v45 = vand.u32 4294901760, %v6126_v4 }
 0xdef   :  { %v6117_v47 = vand.u32 4294901760, %v6116_v3 }
 0xdf0   :  { %v6128_v49 = vsub.f32 %v6126_v4, %v6127_v45 }
 0xdf1   :  { %7663 = vmatprep.mubr.f32.mxu0 %v6117_v47  ;;  %v6118_v53 = vsub.f32 %v6116_v3, %v6117_v47 }
 0xdf2   :  { %7664 = vmatmul.mubr.f32.vlgmr.msra.gmra.mrb[12].mxu0 %v6127_v45  ;;  %v6129_v56 = vand.u32 4294901760, %v6128_v49 }
 0xdf3   :  { %8107 = vmatpush3.bf16.msra.mxu0 %v8104_v55  ;;  %7682 = vmatprep.mubr.f32.mxu0 %v6115_v50  ;;  %v6119_v54 = vand.u32 4294901760, %v6118_v53 }
 0xdf4   :  { %8109 = vmatprep.subr.bf16.mxu0 %v8108_v7 }
 0xdf5   :  { %7606 = vmatprep.mubr.f32.mxu1 %v6119_v54 }
 0xdf6   :  { %7607 = vmatmul.mubr.f32.vlgmr.msra.gmra.mrb[10].mxu1 %v6129_v56 }
 0xdf7   :  { %8059 = vmatpush3.bf16.msra.mxu1 %v8056_v63  ;;  %8111 = vmatpush3.bf16.msra.mxu0 %v8108_v7 }
 0xdf8   :  { %7625 = vmatprep.mubr.f32.mxu1 %v6115_v50  ;;  %8061 = vmatprep.subr.bf16.mxu1 %v8060_v16 }
 0xdf9   :  { %8113 = vmatprep.subr.bf16.mxu0 %v8112_v2 }
 0xdfb   :  { %8063 = vmatpush3.bf16.msra.mxu1 %v8060_v16  ;;  %8115 = vmatpush3.bf16.msra.mxu0 %v8112_v2 }
 0xdfc   :  { %8065 = vmatprep.subr.bf16.mxu1 %v8064_v24  ;;  %8117 = vmatprep.subr.bf16.mxu0 %v8116_v17 }
 0xdff   :  { %8067 = vmatpush3.bf16.msra.mxu1 %v8064_v24  ;;  %8119 = vmatpush3.bf16.msra.mxu0 %v8116_v17  ;;  %v6695_v24 = vld [vmem:[%s8916_s13] ss:$0 sm:$0xff] }
 0xe00   :  { %8069 = vmatprep.subr.bf16.mxu1 %v8068_v31  ;;  %8121 = vmatprep.subr.bf16.mxu0 %v8789_v10 }
 0xe02   :  { %7683 = vmatmul.mubr.f32.vlgmr.msra.gmra.mrb[12].mxu0 %v6125_v42 }
 0xe03   :  { %8071 = vmatpush3.bf16.msra.mxu1 %v8068_v31  ;;  %8123 = vmatpush3.bf16.msra.mxu0 %v8789_v10 }
 0xe04   :  { %7701 = vmatprep.mubr.f32.mxu0 %v6115_v50  ;;  %8073 = vmatprep.subr.bf16.mxu1 %v8072_v32 }
 0xe05   :  { %8125 = vmatprep.subr.bf16.mxu0 %v8824_v52 }
 0xe06   :  { %7626 = vmatmul.mubr.f32.vlgmr.msra.gmra.mrb[10].mxu1 %v6125_v42 }
 0xe07   :  { %8075 = vmatpush3.bf16.msra.mxu1 %v8072_v32  ;;  %7644 = vmatprep.mubr.f32.mxu1 %v6116_v3 }
 0xe08   :  { %8127 = vmatpush3.bf16.msra.mxu0 %v8824_v52  ;;  %8077 = vmatprep.subr.bf16.mxu1 %v8076_v33  ;;  %v6693_v52 = vld [vmem:[%s8914_s11] ss:$0 sm:$0xff] }
 0xe09   :  { %8129 = vmatprep.subr.bf16.mxu0 %v8836_v44 }
 0xe0b   :  { %8079 = vmatpush3.bf16.msra.mxu1 %v8076_v33 }
 0xe0c   :  { %8131 = vmatpush3.bf16.msra.mxu0 %v8836_v44  ;;  %8081 = vmatprep.subr.bf16.mxu1 %v8080_v34 }
 0xe0d   :  { %8133 = vmatprep.subr.bf16.mxu0 %v8848_v46 }
 0xe0f   :  { %8083 = vmatpush3.bf16.msra.mxu1 %v8080_v34 }
 0xe10   :  { %8135 = vmatpush3.bf16.msra.mxu0 %v8848_v46  ;;  %8085 = vmatprep.subr.bf16.mxu1 %v8084_v35 }
 0xe13   :  { %7702 = vmatmul.mubr.f32.vlgmr.msra.gmra.mrb[12].mxu0 %v6125_v42  ;;  %8087 = vmatpush3.bf16.msra.mxu1 %v8084_v35 }
 0xe16   :  { %7645 = vmatmul.mubr.f32.vlgmr.msra.gmra.mrb[10].mxu1 %v6126_v4 }
 0xee6   :  { %v7703_v10 = vpop.f32.mrb[12].mxu0 }
 0xee7   :  { %v6612_v55 = vpop.f32.mrb[13].mxu0 }
 0xee9   :  { %v7646_v57 = vpop.f32.mrb[10].mxu1 }
 0xeea   :  { %v8150_v58 = vadd.f32 %v7646_v57, %v6693_v52  ;;  %v6336_v59 = vpop.f32.mrb[11].mxu1 }
 0xeeb   :  { %v8152_v44 = vadd.f32 %v6693_v52, %v6336_v59 }
 0xeec   :  { %v8151_v60 = vadd.f32 %v8150_v58, %v7703_v10 }
 0xeed   :  { %v8153_v61 = vadd.f32 %v8152_v44, %v6612_v55 }
 0xeee   :  { %v6623_v48 = vadd.f32 %v8151_v60, %v8804_v26 }
 0xeef   :  { %v6622_v46 = vadd.f32 %v8153_v61, %v8800_v18 }
 0xef0   :  { %v6627_v62 = vsel %vm91_vm0, %v6623_v48, 0.0 }
 0xef1   :  { %6628 = vadd.xlane.f32.xlu0 %v6627_v62  ;;  %v6624_v63 = vsel %vm91_vm0, %v6622_v46, 0.0 }
 0xef2   :  { %6625 = vadd.xlane.f32.xlu1 %v6624_v63 }
 0xf7e   :  { %v6629_v0 = vpop.xlane.xlu0 %6628 }
 0xf7f   :  { %v6631_v5 = vmul.f32 0.03125, %v6629_v0  ;;  %v6626_v6 = vpop.xlane.xlu1 %6625 }
 0xf80   :  { %v6630_v7 = vmul.f32 0.03125, %v6626_v6 }
 0xf81   :  { %v6633_v8 = vsub.f32 %v6623_v48, %v6631_v5 }
 0xf82   :  { %v6632_v9 = vsub.f32 %v6622_v46, %v6630_v7 }
 0xf83   :  { %v6635_v1 = vmul.f32 %v6633_v8, %v6633_v8 }
 0xf84   :  { %v6634_v11 = vmul.f32 %v6632_v9, %v6632_v9 }
 0xf85   :  { %v6639_v12 = vsel %vm91_vm0, %v6635_v1, 0.0 }
 0xf86   :  { %6640 = vadd.xlane.f32.xlu0 %v6639_v12  ;;  %v6636_v26 = vsel %vm91_vm0, %v6634_v11, 0.0 }
 0xf87   :  { %6637 = vadd.xlane.f32.xlu1 %v6636_v26 }
0x1013   :  { %v6641_v18 = vpop.xlane.xlu0 %6640 }
0x1014   :  { %v6643_v2 = vmul.f32 0.03125, %v6641_v18  ;;  %v6638_v13 = vpop.xlane.xlu1 %6637 }
0x1015   :  { %v6642_v14 = vmul.f32 0.03125, %v6638_v13 }
0x1016   :  { %v6645_v15 = vadd.f32 1e-05, %v6643_v2 }
0x1017   :  { %v6644_v16 = vadd.f32 1e-05, %v6642_v14 }
0x1018   :  { %8326 = vrsqrt.f32 %v6645_v15 }
0x1019   :  { %8328 = vrsqrt.f32 %v6644_v16 }
0x1022   :  { %v8327_v19 = vpop.eup %8326 }
0x1023   :  { %v8329_v21 = vpop.eup %8328  ;;  %v6649_v22 = vmul.f32 %v8327_v19, %v6633_v8 }
0x1024   :  { %v6648_v23 = vmul.f32 %v8329_v21, %v6632_v9 }
0x1025   :  { %v6658_v25 = vmul.f32 %v6694_v20, %v6649_v22 }
0x1026   :  { %v6657_v17 = vmul.f32 %v6694_v20, %v6648_v23 }
0x1027   :  { %v6667_v27 = vadd.f32 %v6695_v24, %v6658_v25 }
0x1028   :  { %v6666_v28 = vadd.f32 %v6695_v24, %v6657_v17 }
0x1029   :  { %6669 = vst.msk [vmem:[#allocation7 + $0x8] sm:$0xff] %vm91_vm0, %v6667_v27 }
0x102a   :  { %6668 = vst.msk [vmem:[#allocation7] sm:$0xff] %vm91_vm0, %v6666_v28 }
0x102b   :  { %8387 = shalt.err (!%p8384_p6)
}
0x102c   :  { %s8388_s28 = scalar_lea.hbm %s8917_s14, 256 }
0x102d   :  { %p8389_p7 = scmp.ne.s32.totalorder %s8917_s14, %s8388_s28  ;;  %p8392_p8 = scmp.lt.u32.totalorder %s8388_s28, %s8917_s14 }
0x102f   :  { %p8394_p9 = pnand %p8392_p8, %p8389_p7 }
0x1031   :  { %8397 = shalt.err (!%p8394_p9)
}
0x1032   :  { %6681 = dma.vmem_to_hbm [thread:$0]  %s6676_s15, 256, %s8917_s14, [#allocation4], %s8405_s23, %s8405_s23, %s8406_s24  }
0x1033   :  { %8402 = dma.done.wait [#allocation4], 256  }
0x1034   :  { %8403 = vsyncadd [#allocation4], 4294967040 }
0x1035   :  { %6685 = vsyncpa [#allocation3], 1 }
0x1036   :  { %6686 = vsyncpa [#allocation6], 1 }
0x1037   :  { %6687 = vsyncpa [#allocation4], 1 }

</bundles_post_ra>
